<compile_context>
chip_gen: v6e
topology: v6e:2x2x1
jax: 0.10.0
libtpu: 0.0.40
codegen_flags: <defaults>
</compile_context>

<pallas_src>
import functools

import jax
import jax.numpy as jnp
from jax.experimental import pallas as pl
from jax.experimental.pallas import tpu as pltpu


def _inception_kernel(x_ref, col_ref, w_hw_ref, b_hw_ref, w_w_ref, b_w_ref,
                      w_h_ref, b_h_ref, o_ref, *, gc, H, W,
                      sq_off, band_w_off, band_h_off):
    """One grid step = one (batch, branch) pair over a gc-channel group.

    x_ref / o_ref : VMEM (gc, 1, H*W) conv-channel slab (o aliases x's HBM)
    col_ref       : VMEM (1, H*W) int32, flat-index % W (for dw edge masks)
    w_*_ref       : VMEM (gc, K) per-channel tap matrices
    b_*_ref       : VMEM (gc, 1) per-channel bias
    """
    j = pl.program_id(1)  # 0: 3x3 square, 1: 1 x band, 2: band x 1
    HW = H * W

    x_in = x_ref[:, 0, :].astype(jnp.float32)                 # (gc, HW)
    flat = jax.lax.broadcasted_iota(jnp.int32, (1, HW), 1)    # flat position
    col = col_ref[...]                                        # flat % W

    def run_branch(w_ref, b_ref, offsets):
        acc = jnp.zeros((gc, HW), jnp.float32)
        for k, (dh, dw) in enumerate(offsets):
            off = dh * W + dw
            if off == 0:
                win = x_in
            else:
                # win[i] = x_in[(i + off) mod HW]  (wrap fixed up by masks)
                win = pltpu.roll(x_in, shift=(-off) % HW, axis=1)
            cond = None
            if dh != 0:
                # valid rows: 0 <= h+dh < H  <=>  flat in [lo, hi)
                lo = max(0, -dh) * W
                hi = HW - max(0, dh) * W
                cond = (flat >= lo) & (flat < hi)
            if dw != 0:
                # valid cols: 0 <= w+dw < W
                ccond = (col >= -dw) & (col < W - dw)
                cond = ccond if cond is None else (cond & ccond)
            if cond is not None:
                win = jnp.where(cond, win, 0.0)
            acc = acc + win * w_ref[:, k:k + 1]   # (gc,1) lane-broadcast scale
        o_ref[:, 0, :] = (acc + b_ref[...]).astype(o_ref.dtype)

    @pl.when(j == 0)
    def _():
        run_branch(w_hw_ref, b_hw_ref, sq_off)

    @pl.when(j == 1)
    def _():
        run_branch(w_w_ref, b_w_ref, band_w_off)

    @pl.when(j == 2)
    def _():
        run_branch(w_h_ref, b_h_ref, band_h_off)


def inception_dwconv2d(x, params, split_indexes,
                       square_kernel_size=3, band_kernel_size=11):
    """x: (B, C, H, W).  Channels [:n_id] pass through untouched (aliased)."""
    B, C, H, W = x.shape
    n_id, gc, _, _ = split_indexes
    HW = H * W
    assert square_kernel_size % 2 == 1 and band_kernel_size % 2 == 1
    # Standard incnext configs: gc = C/8, n_id = 5*gc.
    # TODO(synk): support n_id % gc != 0 / C % gc != 0 (non-standard ratios).
    assert n_id % gc == 0 and C % gc == 0
    ch0 = n_id // gc
    nblk = C // gc

    rs = square_kernel_size // 2
    rb = band_kernel_size // 2
    sq_off = [(dh, dw) for dh in range(-rs, rs + 1) for dw in range(-rs, rs + 1)]
    band_w_off = [(0, dw) for dw in range(-rb, rb + 1)]
    band_h_off = [(dh, 0) for dh in range(-rb, rb + 1)]

    f32 = jnp.float32
    ks2 = square_kernel_size * square_kernel_size
    # Dense (gc, K) tap matrices: channels on sublanes, taps on lanes, so a
    # static column slice is the per-channel scale for tap k (no tile padding).
    w_hw = params["w_hw"].astype(f32).reshape(gc, ks2)
    w_w = params["w_w"].astype(f32).reshape(gc, band_kernel_size)
    w_h = params["w_h"].astype(f32).reshape(gc, band_kernel_size)
    b_hw = params["b_hw"].astype(f32).reshape(gc, 1)
    b_w = params["b_w"].astype(f32).reshape(gc, 1)
    b_h = params["b_h"].astype(f32).reshape(gc, 1)

    # Flat column index (i % W), precomputed host-side so the kernel needs no
    # integer remainder.
    col_idx = (jnp.arange(HW, dtype=jnp.int32) % W).reshape(1, HW)

    # Lane-dense view of x; contiguous reshape -> bitcast, no HBM pass.
    xf = x.reshape(B * C, 1, HW)

    kernel = functools.partial(
        _inception_kernel, gc=gc, H=H, W=W,
        sq_off=sq_off, band_w_off=band_w_off, band_h_off=band_h_off)

    conv_spec = pl.BlockSpec((gc, 1, HW),
                             lambda b, j: (b * nblk + ch0 + j, 0, 0))

    def whole(arr):
        zeros = (0,) * arr.ndim
        return pl.BlockSpec(arr.shape, lambda b, j: zeros)

    flops = 2 * (ks2 + 2 * band_kernel_size) * gc * HW * B
    bytes_accessed = (2 * 3 * gc * HW * 4 * B
                      + 4 * (w_hw.size + w_w.size + w_h.size + 3 * gc) + 4 * HW)

    out = pl.pallas_call(
        kernel,
        out_shape=jax.ShapeDtypeStruct((B * C, 1, HW), x.dtype),
        grid=(B, 3),
        in_specs=[
            conv_spec,             # x (aliased to output)
            whole(col_idx),
            whole(w_hw), whole(b_hw),
            whole(w_w), whole(b_w),
            whole(w_h), whole(b_h),
        ],
        out_specs=conv_spec,
        input_output_aliases={0: 0},   # identity channels never touch HBM again
        compiler_params=pltpu.CompilerParams(
            dimension_semantics=("parallel", "arbitrary")),
        cost_estimate=pl.CostEstimate(
            flops=flops, transcendentals=0, bytes_accessed=bytes_accessed),
    )(xf, col_idx, w_hw, b_hw, w_w, b_w, w_h, b_h)

    return out.reshape(B, C, H, W)


def init_params(key, in_channels, square_kernel_size=3, band_kernel_size=11,
                branch_ratio=0.125):
    gc = int(in_channels * branch_ratio)
    k = jax.random.split(key, 6)
    params = {
        "w_hw": 0.1 * jax.random.normal(
            k[0], (gc, square_kernel_size, square_kernel_size), jnp.float32),
        "b_hw": 0.1 * jax.random.normal(k[1], (gc,), jnp.float32),
        "w_w": 0.1 * jax.random.normal(
            k[2], (gc, 1, band_kernel_size), jnp.float32),
        "b_w": 0.1 * jax.random.normal(k[3], (gc,), jnp.float32),
        "w_h": 0.1 * jax.random.normal(
            k[4], (gc, band_kernel_size, 1), jnp.float32),
        "b_h": 0.1 * jax.random.normal(k[5], (gc,), jnp.float32),
    }
    split_indexes = (in_channels - 3 * gc, gc, gc, gc)
    return params, split_indexes


# ------------------------- pure-JAX reference -------------------------------

def _ref_depthwise_conv2d(x, w, b, kh, kw):
    C = x.shape[1]
    wk = w.reshape(C, 1, kh, kw)
    y = jax.lax.conv_general_dilated(
        x, wk, window_strides=(1, 1),
        padding=((kh // 2, kh // 2), (kw // 2, kw // 2)),
        dimension_numbers=("NCHW", "OIHW", "NCHW"),
        feature_group_count=C)
    return y + b[None, :, None, None]


def _ref_inception(x, params, split_indexes,
                   square_kernel_size=3, band_kernel_size=11):
    n_id, gc, _, _ = split_indexes
    x_id = x[:, :n_id]
    x_hw = x[:, n_id:n_id + gc]
    x_w = x[:, n_id + gc:n_id + 2 * gc]
    x_h = x[:, n_id + 2 * gc:n_id + 3 * gc]
    return jnp.concatenate([
        x_id,
        _ref_depthwise_conv2d(x_hw, params["w_hw"], params["b_hw"],
                              square_kernel_size, square_kernel_size),
        _ref_depthwise_conv2d(x_w, params["w_w"], params["b_w"],
                              1, band_kernel_size),
        _ref_depthwise_conv2d(x_h, params["w_h"], params["b_h"],
                              band_kernel_size, 1),
    ], axis=1)


if __name__ == "__main__":
    B, C, H, W = 2, 32, 16, 16      # in_channels=32, branch_ratio=0.125 -> gc=4
    key = jax.random.PRNGKey(0)
    kx, kp = jax.random.split(key)
    x = jax.random.normal(kx, (B, C, H, W), jnp.float32)
    params, split_indexes = init_params(kp, C)

    fwd = jax.jit(lambda xx, pp: inception_dwconv2d(xx, pp, split_indexes))
    out = jax.block_until_ready(fwd(x, params))

    ref = jax.block_until_ready(_ref_inception(x, params, split_indexes))
    assert out.shape == (B, C, H, W)
    assert jnp.allclose(out, ref, atol=1e-4, rtol=1e-4), "mismatch vs JAX reference"

    print("KERNEL_OK")
</pallas_src>

<mosaic_0001>
module attributes {stable_mosaic.version = 11 : i64} {
  func.func @_inception_kernel(%arg0: i32, %arg1: i32, %arg2: memref<4x1x256xf32, #tpu.memory_space<vmem>>, %arg3: memref<1x256xi32, #tpu.memory_space<vmem>>, %arg4: memref<4x9xf32, #tpu.memory_space<vmem>>, %arg5: memref<4x1xf32, #tpu.memory_space<vmem>>, %arg6: memref<4x11xf32, #tpu.memory_space<vmem>>, %arg7: memref<4x1xf32, #tpu.memory_space<vmem>>, %arg8: memref<4x11xf32, #tpu.memory_space<vmem>>, %arg9: memref<4x1xf32, #tpu.memory_space<vmem>>, %arg10: memref<4x1x256xf32, #tpu.memory_space<vmem>>) attributes {dimension_semantics = [#tpu.dimension_semantics<parallel>, #tpu.dimension_semantics<arbitrary>], iteration_bounds = array<i64: 2, 3>, scalar_prefetch = 0 : i64, scratch_operands = 0 : i64, tpu.core_type = #tpu.core_type<tc>, window_params = [{transform_indices = @transform_0, window_bounds = array<i64: 4, 1, 256>}, {pipeline_mode = #tpu.pipeline_mode<synchronous>, transform_indices = @transform_1, window_bounds = array<i64: 1, 256>}, {pipeline_mode = #tpu.pipeline_mode<synchronous>, transform_indices = @transform_2, window_bounds = array<i64: 4, 9>}, {pipeline_mode = #tpu.pipeline_mode<synchronous>, transform_indices = @transform_3, window_bounds = array<i64: 4, 1>}, {pipeline_mode = #tpu.pipeline_mode<synchronous>, transform_indices = @transform_4, window_bounds = array<i64: 4, 11>}, {pipeline_mode = #tpu.pipeline_mode<synchronous>, transform_indices = @transform_5, window_bounds = array<i64: 4, 1>}, {pipeline_mode = #tpu.pipeline_mode<synchronous>, transform_indices = @transform_6, window_bounds = array<i64: 4, 11>}, {pipeline_mode = #tpu.pipeline_mode<synchronous>, transform_indices = @transform_7, window_bounds = array<i64: 4, 1>}, {transform_indices = @transform_8, window_bounds = array<i64: 4, 1, 256>}]} {
    %c0 = arith.constant 0 : index
    %c0_0 = arith.constant 0 : index
    %c0_1 = arith.constant 0 : index
    %0 = vector.load %arg2[%c0, %c0_0, %c0_1] : memref<4x1x256xf32, #tpu.memory_space<vmem>>, vector<4x1x256xf32>
    %1 = vector.shape_cast %0 : vector<4x1x256xf32> to vector<4x256xf32>
    %2 = tpu.iota {dimensions = array<i32: 1>} : vector<1x256xi32>
    %c0_2 = arith.constant 0 : index
    %c0_3 = arith.constant 0 : index
    %3 = vector.load %arg3[%c0_2, %c0_3] : memref<1x256xi32, #tpu.memory_space<vmem>>, vector<1x256xi32>
    %c0_i32 = arith.constant 0 : i32
    %4 = arith.cmpi eq, %arg1, %c0_i32 : i32
    %5 = arith.extui %4 : i1 to i32
    %c0_i32_4 = arith.constant 0 : i32
    %6 = arith.cmpi ne, %5, %c0_i32_4 : i32
    scf.if %6 {
      %cst = arith.constant 0.000000e+00 : f32
      %13 = vector.broadcast %cst : f32 to vector<4x256xf32>
      %c17_i32 = arith.constant 17 : i32
      %14 = tpu.dynamic_rotate %1 by %c17_i32 dim 1 : vector<4x256xf32>, i32 -> vector<4x256xf32>
      %c16_i32 = arith.constant 16 : i32
      %15 = vector.broadcast %c16_i32 : i32 to vector<1x256xi32>
      %16 = arith.cmpi sge, %2, %15 : vector<1x256xi32>
      %c256_i32 = arith.constant 256 : i32
      %17 = vector.broadcast %c256_i32 : i32 to vector<1x256xi32>
      %18 = arith.cmpi slt, %2, %17 : vector<1x256xi32>
      %19 = arith.andi %16, %18 : vector<1x256xi1>
      %c1_i32_7 = arith.constant 1 : i32
      %20 = vector.broadcast %c1_i32_7 : i32 to vector<1x256xi32>
      %21 = arith.cmpi sge, %3, %20 : vector<1x256xi32>
      %c17_i32_8 = arith.constant 17 : i32
      %22 = vector.broadcast %c17_i32_8 : i32 to vector<1x256xi32>
      %23 = arith.cmpi slt, %3, %22 : vector<1x256xi32>
      %24 = arith.andi %21, %23 : vector<1x256xi1>
      %25 = arith.andi %19, %24 : vector<1x256xi1>
      %cst_9 = arith.constant 0.000000e+00 : f32
      %26 = vector.shape_cast %25 : vector<1x256xi1> to vector<1x256xi1>
      %27 = vector.broadcast %26 : vector<1x256xi1> to vector<4x256xi1>
      %28 = vector.broadcast %cst_9 : f32 to vector<4x256xf32>
      %29 = arith.select %27, %14, %28 : vector<4x256xi1>, vector<4x256xf32>
      %c0_10 = arith.constant 0 : index
      %c0_11 = arith.constant 0 : index
      %30 = vector.load %arg4[%c0_10, %c0_11] : memref<4x9xf32, #tpu.memory_space<vmem>>, vector<4x1xf32>
      %31 = vector.broadcast %30 : vector<4x1xf32> to vector<4x256xf32>
      %32 = arith.mulf %29, %31 : vector<4x256xf32>
      %33 = arith.addf %13, %32 : vector<4x256xf32>
      %c16_i32_12 = arith.constant 16 : i32
      %34 = tpu.dynamic_rotate %1 by %c16_i32_12 dim 1 : vector<4x256xf32>, i32 -> vector<4x256xf32>
      %c16_i32_13 = arith.constant 16 : i32
      %35 = vector.broadcast %c16_i32_13 : i32 to vector<1x256xi32>
      %36 = arith.cmpi sge, %2, %35 : vector<1x256xi32>
      %c256_i32_14 = arith.constant 256 : i32
      %37 = vector.broadcast %c256_i32_14 : i32 to vector<1x256xi32>
      %38 = arith.cmpi slt, %2, %37 : vector<1x256xi32>
      %39 = arith.andi %36, %38 : vector<1x256xi1>
      %cst_15 = arith.constant 0.000000e+00 : f32
      %40 = vector.shape_cast %39 : vector<1x256xi1> to vector<1x256xi1>
      %41 = vector.broadcast %40 : vector<1x256xi1> to vector<4x256xi1>
      %42 = vector.broadcast %cst_15 : f32 to vector<4x256xf32>
      %43 = arith.select %41, %34, %42 : vector<4x256xi1>, vector<4x256xf32>
      %c0_16 = arith.constant 0 : index
      %c1 = arith.constant 1 : index
      %44 = vector.load %arg4[%c0_16, %c1] : memref<4x9xf32, #tpu.memory_space<vmem>>, vector<4x1xf32>
      %45 = vector.broadcast %44 : vector<4x1xf32> to vector<4x256xf32>
      %46 = arith.mulf %43, %45 : vector<4x256xf32>
      %47 = arith.addf %33, %46 : vector<4x256xf32>
      %c15_i32 = arith.constant 15 : i32
      %48 = tpu.dynamic_rotate %1 by %c15_i32 dim 1 : vector<4x256xf32>, i32 -> vector<4x256xf32>
      %c16_i32_17 = arith.constant 16 : i32
      %49 = vector.broadcast %c16_i32_17 : i32 to vector<1x256xi32>
      %50 = arith.cmpi sge, %2, %49 : vector<1x256xi32>
      %c256_i32_18 = arith.constant 256 : i32
      %51 = vector.broadcast %c256_i32_18 : i32 to vector<1x256xi32>
      %52 = arith.cmpi slt, %2, %51 : vector<1x256xi32>
      %53 = arith.andi %50, %52 : vector<1x256xi1>
      %c-1_i32 = arith.constant -1 : i32
      %54 = vector.broadcast %c-1_i32 : i32 to vector<1x256xi32>
      %55 = arith.cmpi sge, %3, %54 : vector<1x256xi32>
      %c15_i32_19 = arith.constant 15 : i32
      %56 = vector.broadcast %c15_i32_19 : i32 to vector<1x256xi32>
      %57 = arith.cmpi slt, %3, %56 : vector<1x256xi32>
      %58 = arith.andi %55, %57 : vector<1x256xi1>
      %59 = arith.andi %53, %58 : vector<1x256xi1>
      %cst_20 = arith.constant 0.000000e+00 : f32
      %60 = vector.shape_cast %59 : vector<1x256xi1> to vector<1x256xi1>
      %61 = vector.broadcast %60 : vector<1x256xi1> to vector<4x256xi1>
      %62 = vector.broadcast %cst_20 : f32 to vector<4x256xf32>
      %63 = arith.select %61, %48, %62 : vector<4x256xi1>, vector<4x256xf32>
      %c0_21 = arith.constant 0 : index
      %c2 = arith.constant 2 : index
      %64 = vector.load %arg4[%c0_21, %c2] : memref<4x9xf32, #tpu.memory_space<vmem>>, vector<4x1xf32>
      %65 = vector.broadcast %64 : vector<4x1xf32> to vector<4x256xf32>
      %66 = arith.mulf %63, %65 : vector<4x256xf32>
      %67 = arith.addf %47, %66 : vector<4x256xf32>
      %c1_i32_22 = arith.constant 1 : i32
      %68 = tpu.dynamic_rotate %1 by %c1_i32_22 dim 1 : vector<4x256xf32>, i32 -> vector<4x256xf32>
      %c1_i32_23 = arith.constant 1 : i32
      %69 = vector.broadcast %c1_i32_23 : i32 to vector<1x256xi32>
      %70 = arith.cmpi sge, %3, %69 : vector<1x256xi32>
      %c17_i32_24 = arith.constant 17 : i32
      %71 = vector.broadcast %c17_i32_24 : i32 to vector<1x256xi32>
      %72 = arith.cmpi slt, %3, %71 : vector<1x256xi32>
      %73 = arith.andi %70, %72 : vector<1x256xi1>
      %cst_25 = arith.constant 0.000000e+00 : f32
      %74 = vector.shape_cast %73 : vector<1x256xi1> to vector<1x256xi1>
      %75 = vector.broadcast %74 : vector<1x256xi1> to vector<4x256xi1>
      %76 = vector.broadcast %cst_25 : f32 to vector<4x256xf32>
      %77 = arith.select %75, %68, %76 : vector<4x256xi1>, vector<4x256xf32>
      %c0_26 = arith.constant 0 : index
      %c3 = arith.constant 3 : index
      %78 = vector.load %arg4[%c0_26, %c3] : memref<4x9xf32, #tpu.memory_space<vmem>>, vector<4x1xf32>
      %79 = vector.broadcast %78 : vector<4x1xf32> to vector<4x256xf32>
      %80 = arith.mulf %77, %79 : vector<4x256xf32>
      %81 = arith.addf %67, %80 : vector<4x256xf32>
      %c0_27 = arith.constant 0 : index
      %c4 = arith.constant 4 : index
      %82 = vector.load %arg4[%c0_27, %c4] : memref<4x9xf32, #tpu.memory_space<vmem>>, vector<4x1xf32>
      %83 = vector.broadcast %82 : vector<4x1xf32> to vector<4x256xf32>
      %84 = arith.mulf %1, %83 : vector<4x256xf32>
      %85 = arith.addf %81, %84 : vector<4x256xf32>
      %c255_i32 = arith.constant 255 : i32
      %86 = tpu.dynamic_rotate %1 by %c255_i32 dim 1 : vector<4x256xf32>, i32 -> vector<4x256xf32>
      %c-1_i32_28 = arith.constant -1 : i32
      %87 = vector.broadcast %c-1_i32_28 : i32 to vector<1x256xi32>
      %88 = arith.cmpi sge, %3, %87 : vector<1x256xi32>
      %c15_i32_29 = arith.constant 15 : i32
      %89 = vector.broadcast %c15_i32_29 : i32 to vector<1x256xi32>
      %90 = arith.cmpi slt, %3, %89 : vector<1x256xi32>
      %91 = arith.andi %88, %90 : vector<1x256xi1>
      %cst_30 = arith.constant 0.000000e+00 : f32
      %92 = vector.shape_cast %91 : vector<1x256xi1> to vector<1x256xi1>
      %93 = vector.broadcast %92 : vector<1x256xi1> to vector<4x256xi1>
      %94 = vector.broadcast %cst_30 : f32 to vector<4x256xf32>
      %95 = arith.select %93, %86, %94 : vector<4x256xi1>, vector<4x256xf32>
      %c0_31 = arith.constant 0 : index
      %c5 = arith.constant 5 : index
      %96 = vector.load %arg4[%c0_31, %c5] : memref<4x9xf32, #tpu.memory_space<vmem>>, vector<4x1xf32>
      %97 = vector.broadcast %96 : vector<4x1xf32> to vector<4x256xf32>
      %98 = arith.mulf %95, %97 : vector<4x256xf32>
      %99 = arith.addf %85, %98 : vector<4x256xf32>
      %c241_i32 = arith.constant 241 : i32
      %100 = tpu.dynamic_rotate %1 by %c241_i32 dim 1 : vector<4x256xf32>, i32 -> vector<4x256xf32>
      %c0_i32_32 = arith.constant 0 : i32
      %101 = vector.broadcast %c0_i32_32 : i32 to vector<1x256xi32>
      %102 = arith.cmpi sge, %2, %101 : vector<1x256xi32>
      %c240_i32 = arith.constant 240 : i32
      %103 = vector.broadcast %c240_i32 : i32 to vector<1x256xi32>
      %104 = arith.cmpi slt, %2, %103 : vector<1x256xi32>
      %105 = arith.andi %102, %104 : vector<1x256xi1>
      %c1_i32_33 = arith.constant 1 : i32
      %106 = vector.broadcast %c1_i32_33 : i32 to vector<1x256xi32>
      %107 = arith.cmpi sge, %3, %106 : vector<1x256xi32>
      %c17_i32_34 = arith.constant 17 : i32
      %108 = vector.broadcast %c17_i32_34 : i32 to vector<1x256xi32>
      %109 = arith.cmpi slt, %3, %108 : vector<1x256xi32>
      %110 = arith.andi %107, %109 : vector<1x256xi1>
      %111 = arith.andi %105, %110 : vector<1x256xi1>
      %cst_35 = arith.constant 0.000000e+00 : f32
      %112 = vector.shape_cast %111 : vector<1x256xi1> to vector<1x256xi1>
      %113 = vector.broadcast %112 : vector<1x256xi1> to vector<4x256xi1>
      %114 = vector.broadcast %cst_35 : f32 to vector<4x256xf32>
      %115 = arith.select %113, %100, %114 : vector<4x256xi1>, vector<4x256xf32>
      %c0_36 = arith.constant 0 : index
      %c6 = arith.constant 6 : index
      %116 = vector.load %arg4[%c0_36, %c6] : memref<4x9xf32, #tpu.memory_space<vmem>>, vector<4x1xf32>
      %117 = vector.broadcast %116 : vector<4x1xf32> to vector<4x256xf32>
      %118 = arith.mulf %115, %117 : vector<4x256xf32>
      %119 = arith.addf %99, %118 : vector<4x256xf32>
      %c240_i32_37 = arith.constant 240 : i32
      %120 = tpu.dynamic_rotate %1 by %c240_i32_37 dim 1 : vector<4x256xf32>, i32 -> vector<4x256xf32>
      %c0_i32_38 = arith.constant 0 : i32
      %121 = vector.broadcast %c0_i32_38 : i32 to vector<1x256xi32>
      %122 = arith.cmpi sge, %2, %121 : vector<1x256xi32>
      %c240_i32_39 = arith.constant 240 : i32
      %123 = vector.broadcast %c240_i32_39 : i32 to vector<1x256xi32>
      %124 = arith.cmpi slt, %2, %123 : vector<1x256xi32>
      %125 = arith.andi %122, %124 : vector<1x256xi1>
      %cst_40 = arith.constant 0.000000e+00 : f32
      %126 = vector.shape_cast %125 : vector<1x256xi1> to vector<1x256xi1>
      %127 = vector.broadcast %126 : vector<1x256xi1> to vector<4x256xi1>
      %128 = vector.broadcast %cst_40 : f32 to vector<4x256xf32>
      %129 = arith.select %127, %120, %128 : vector<4x256xi1>, vector<4x256xf32>
      %c0_41 = arith.constant 0 : index
      %c7 = arith.constant 7 : index
      %130 = vector.load %arg4[%c0_41, %c7] : memref<4x9xf32, #tpu.memory_space<vmem>>, vector<4x1xf32>
      %131 = vector.broadcast %130 : vector<4x1xf32> to vector<4x256xf32>
      %132 = arith.mulf %129, %131 : vector<4x256xf32>
      %133 = arith.addf %119, %132 : vector<4x256xf32>
      %c239_i32 = arith.constant 239 : i32
      %134 = tpu.dynamic_rotate %1 by %c239_i32 dim 1 : vector<4x256xf32>, i32 -> vector<4x256xf32>
      %c0_i32_42 = arith.constant 0 : i32
      %135 = vector.broadcast %c0_i32_42 : i32 to vector<1x256xi32>
      %136 = arith.cmpi sge, %2, %135 : vector<1x256xi32>
      %c240_i32_43 = arith.constant 240 : i32
      %137 = vector.broadcast %c240_i32_43 : i32 to vector<1x256xi32>
      %138 = arith.cmpi slt, %2, %137 : vector<1x256xi32>
      %139 = arith.andi %136, %138 : vector<1x256xi1>
      %c-1_i32_44 = arith.constant -1 : i32
      %140 = vector.broadcast %c-1_i32_44 : i32 to vector<1x256xi32>
      %141 = arith.cmpi sge, %3, %140 : vector<1x256xi32>
      %c15_i32_45 = arith.constant 15 : i32
      %142 = vector.broadcast %c15_i32_45 : i32 to vector<1x256xi32>
      %143 = arith.cmpi slt, %3, %142 : vector<1x256xi32>
      %144 = arith.andi %141, %143 : vector<1x256xi1>
      %145 = arith.andi %139, %144 : vector<1x256xi1>
      %cst_46 = arith.constant 0.000000e+00 : f32
      %146 = vector.shape_cast %145 : vector<1x256xi1> to vector<1x256xi1>
      %147 = vector.broadcast %146 : vector<1x256xi1> to vector<4x256xi1>
      %148 = vector.broadcast %cst_46 : f32 to vector<4x256xf32>
      %149 = arith.select %147, %134, %148 : vector<4x256xi1>, vector<4x256xf32>
      %c0_47 = arith.constant 0 : index
      %c8 = arith.constant 8 : index
      %150 = vector.load %arg4[%c0_47, %c8] : memref<4x9xf32, #tpu.memory_space<vmem>>, vector<4x1xf32>
      %151 = vector.broadcast %150 : vector<4x1xf32> to vector<4x256xf32>
      %152 = arith.mulf %149, %151 : vector<4x256xf32>
      %153 = arith.addf %133, %152 : vector<4x256xf32>
      %c0_48 = arith.constant 0 : index
      %c0_49 = arith.constant 0 : index
      %154 = vector.load %arg5[%c0_48, %c0_49] : memref<4x1xf32, #tpu.memory_space<vmem>>, vector<4x1xf32>
      %155 = vector.broadcast %154 : vector<4x1xf32> to vector<4x256xf32>
      %156 = arith.addf %153, %155 : vector<4x256xf32>
      %c0_50 = arith.constant 0 : index
      %c0_51 = arith.constant 0 : index
      %c0_52 = arith.constant 0 : index
      %157 = vector.load %arg10[%c0_50, %c0_51, %c0_52] : memref<4x1x256xf32, #tpu.memory_space<vmem>>, vector<4x1x256xf32>
      %158 = vector.shape_cast %157 : vector<4x1x256xf32> to vector<4x256xf32>
      %159 = vector.shape_cast %156 : vector<4x256xf32> to vector<4x1x256xf32>
      tpu.vector_store %arg10[%c0_50, %c0_51, %c0_52], %159 {strides = array<i32>} : memref<4x1x256xf32, #tpu.memory_space<vmem>>, vector<4x1x256xf32>,
    } else {
    }
    %c1_i32 = arith.constant 1 : i32
    %7 = arith.cmpi eq, %arg1, %c1_i32 : i32
    %8 = arith.extui %7 : i1 to i32
    %c0_i32_5 = arith.constant 0 : i32
    %9 = arith.cmpi ne, %8, %c0_i32_5 : i32
    scf.if %9 {
      %cst = arith.constant 0.000000e+00 : f32
      %13 = vector.broadcast %cst : f32 to vector<4x256xf32>
      %c5_i32 = arith.constant 5 : i32
      %14 = tpu.dynamic_rotate %1 by %c5_i32 dim 1 : vector<4x256xf32>, i32 -> vector<4x256xf32>
      %c5_i32_7 = arith.constant 5 : i32
      %15 = vector.broadcast %c5_i32_7 : i32 to vector<1x256xi32>
      %16 = arith.cmpi sge, %3, %15 : vector<1x256xi32>
      %c21_i32 = arith.constant 21 : i32
      %17 = vector.broadcast %c21_i32 : i32 to vector<1x256xi32>
      %18 = arith.cmpi slt, %3, %17 : vector<1x256xi32>
      %19 = arith.andi %16, %18 : vector<1x256xi1>
      %cst_8 = arith.constant 0.000000e+00 : f32
      %20 = vector.shape_cast %19 : vector<1x256xi1> to vector<1x256xi1>
      %21 = vector.broadcast %20 : vector<1x256xi1> to vector<4x256xi1>
      %22 = vector.broadcast %cst_8 : f32 to vector<4x256xf32>
      %23 = arith.select %21, %14, %22 : vector<4x256xi1>, vector<4x256xf32>
      %c0_9 = arith.constant 0 : index
      %c0_10 = arith.constant 0 : index
      %24 = vector.load %arg6[%c0_9, %c0_10] : memref<4x11xf32, #tpu.memory_space<vmem>>, vector<4x1xf32>
      %25 = vector.broadcast %24 : vector<4x1xf32> to vector<4x256xf32>
      %26 = arith.mulf %23, %25 : vector<4x256xf32>
      %27 = arith.addf %13, %26 : vector<4x256xf32>
      %c4_i32 = arith.constant 4 : i32
      %28 = tpu.dynamic_rotate %1 by %c4_i32 dim 1 : vector<4x256xf32>, i32 -> vector<4x256xf32>
      %c4_i32_11 = arith.constant 4 : i32
      %29 = vector.broadcast %c4_i32_11 : i32 to vector<1x256xi32>
      %30 = arith.cmpi sge, %3, %29 : vector<1x256xi32>
      %c20_i32 = arith.constant 20 : i32
      %31 = vector.broadcast %c20_i32 : i32 to vector<1x256xi32>
      %32 = arith.cmpi slt, %3, %31 : vector<1x256xi32>
      %33 = arith.andi %30, %32 : vector<1x256xi1>
      %cst_12 = arith.constant 0.000000e+00 : f32
      %34 = vector.shape_cast %33 : vector<1x256xi1> to vector<1x256xi1>
      %35 = vector.broadcast %34 : vector<1x256xi1> to vector<4x256xi1>
      %36 = vector.broadcast %cst_12 : f32 to vector<4x256xf32>
      %37 = arith.select %35, %28, %36 : vector<4x256xi1>, vector<4x256xf32>
      %c0_13 = arith.constant 0 : index
      %c1 = arith.constant 1 : index
      %38 = vector.load %arg6[%c0_13, %c1] : memref<4x11xf32, #tpu.memory_space<vmem>>, vector<4x1xf32>
      %39 = vector.broadcast %38 : vector<4x1xf32> to vector<4x256xf32>
      %40 = arith.mulf %37, %39 : vector<4x256xf32>
      %41 = arith.addf %27, %40 : vector<4x256xf32>
      %c3_i32 = arith.constant 3 : i32
      %42 = tpu.dynamic_rotate %1 by %c3_i32 dim 1 : vector<4x256xf32>, i32 -> vector<4x256xf32>
      %c3_i32_14 = arith.constant 3 : i32
      %43 = vector.broadcast %c3_i32_14 : i32 to vector<1x256xi32>
      %44 = arith.cmpi sge, %3, %43 : vector<1x256xi32>
      %c19_i32 = arith.constant 19 : i32
      %45 = vector.broadcast %c19_i32 : i32 to vector<1x256xi32>
      %46 = arith.cmpi slt, %3, %45 : vector<1x256xi32>
      %47 = arith.andi %44, %46 : vector<1x256xi1>
      %cst_15 = arith.constant 0.000000e+00 : f32
      %48 = vector.shape_cast %47 : vector<1x256xi1> to vector<1x256xi1>
      %49 = vector.broadcast %48 : vector<1x256xi1> to vector<4x256xi1>
      %50 = vector.broadcast %cst_15 : f32 to vector<4x256xf32>
      %51 = arith.select %49, %42, %50 : vector<4x256xi1>, vector<4x256xf32>
      %c0_16 = arith.constant 0 : index
      %c2 = arith.constant 2 : index
      %52 = vector.load %arg6[%c0_16, %c2] : memref<4x11xf32, #tpu.memory_space<vmem>>, vector<4x1xf32>
      %53 = vector.broadcast %52 : vector<4x1xf32> to vector<4x256xf32>
      %54 = arith.mulf %51, %53 : vector<4x256xf32>
      %55 = arith.addf %41, %54 : vector<4x256xf32>
      %c2_i32_17 = arith.constant 2 : i32
      %56 = tpu.dynamic_rotate %1 by %c2_i32_17 dim 1 : vector<4x256xf32>, i32 -> vector<4x256xf32>
      %c2_i32_18 = arith.constant 2 : i32
      %57 = vector.broadcast %c2_i32_18 : i32 to vector<1x256xi32>
      %58 = arith.cmpi sge, %3, %57 : vector<1x256xi32>
      %c18_i32 = arith.constant 18 : i32
      %59 = vector.broadcast %c18_i32 : i32 to vector<1x256xi32>
      %60 = arith.cmpi slt, %3, %59 : vector<1x256xi32>
      %61 = arith.andi %58, %60 : vector<1x256xi1>
      %cst_19 = arith.constant 0.000000e+00 : f32
      %62 = vector.shape_cast %61 : vector<1x256xi1> to vector<1x256xi1>
      %63 = vector.broadcast %62 : vector<1x256xi1> to vector<4x256xi1>
      %64 = vector.broadcast %cst_19 : f32 to vector<4x256xf32>
      %65 = arith.select %63, %56, %64 : vector<4x256xi1>, vector<4x256xf32>
      %c0_20 = arith.constant 0 : index
      %c3 = arith.constant 3 : index
      %66 = vector.load %arg6[%c0_20, %c3] : memref<4x11xf32, #tpu.memory_space<vmem>>, vector<4x1xf32>
      %67 = vector.broadcast %66 : vector<4x1xf32> to vector<4x256xf32>
      %68 = arith.mulf %65, %67 : vector<4x256xf32>
      %69 = arith.addf %55, %68 : vector<4x256xf32>
      %c1_i32_21 = arith.constant 1 : i32
      %70 = tpu.dynamic_rotate %1 by %c1_i32_21 dim 1 : vector<4x256xf32>, i32 -> vector<4x256xf32>
      %c1_i32_22 = arith.constant 1 : i32
      %71 = vector.broadcast %c1_i32_22 : i32 to vector<1x256xi32>
      %72 = arith.cmpi sge, %3, %71 : vector<1x256xi32>
      %c17_i32 = arith.constant 17 : i32
      %73 = vector.broadcast %c17_i32 : i32 to vector<1x256xi32>
      %74 = arith.cmpi slt, %3, %73 : vector<1x256xi32>
      %75 = arith.andi %72, %74 : vector<1x256xi1>
      %cst_23 = arith.constant 0.000000e+00 : f32
      %76 = vector.shape_cast %75 : vector<1x256xi1> to vector<1x256xi1>
      %77 = vector.broadcast %76 : vector<1x256xi1> to vector<4x256xi1>
      %78 = vector.broadcast %cst_23 : f32 to vector<4x256xf32>
      %79 = arith.select %77, %70, %78 : vector<4x256xi1>, vector<4x256xf32>
      %c0_24 = arith.constant 0 : index
      %c4 = arith.constant 4 : index
      %80 = vector.load %arg6[%c0_24, %c4] : memref<4x11xf32, #tpu.memory_space<vmem>>, vector<4x1xf32>
      %81 = vector.broadcast %80 : vector<4x1xf32> to vector<4x256xf32>
      %82 = arith.mulf %79, %81 : vector<4x256xf32>
      %83 = arith.addf %69, %82 : vector<4x256xf32>
      %c0_25 = arith.constant 0 : index
      %c5 = arith.constant 5 : index
      %84 = vector.load %arg6[%c0_25, %c5] : memref<4x11xf32, #tpu.memory_space<vmem>>, vector<4x1xf32>
      %85 = vector.broadcast %84 : vector<4x1xf32> to vector<4x256xf32>
      %86 = arith.mulf %1, %85 : vector<4x256xf32>
      %87 = arith.addf %83, %86 : vector<4x256xf32>
      %c255_i32 = arith.constant 255 : i32
      %88 = tpu.dynamic_rotate %1 by %c255_i32 dim 1 : vector<4x256xf32>, i32 -> vector<4x256xf32>
      %c-1_i32 = arith.constant -1 : i32
      %89 = vector.broadcast %c-1_i32 : i32 to vector<1x256xi32>
      %90 = arith.cmpi sge, %3, %89 : vector<1x256xi32>
      %c15_i32 = arith.constant 15 : i32
      %91 = vector.broadcast %c15_i32 : i32 to vector<1x256xi32>
      %92 = arith.cmpi slt, %3, %91 : vector<1x256xi32>
      %93 = arith.andi %90, %92 : vector<1x256xi1>
      %cst_26 = arith.constant 0.000000e+00 : f32
      %94 = vector.shape_cast %93 : vector<1x256xi1> to vector<1x256xi1>
      %95 = vector.broadcast %94 : vector<1x256xi1> to vector<4x256xi1>
      %96 = vector.broadcast %cst_26 : f32 to vector<4x256xf32>
      %97 = arith.select %95, %88, %96 : vector<4x256xi1>, vector<4x256xf32>
      %c0_27 = arith.constant 0 : index
      %c6 = arith.constant 6 : index
      %98 = vector.load %arg6[%c0_27, %c6] : memref<4x11xf32, #tpu.memory_space<vmem>>, vector<4x1xf32>
      %99 = vector.broadcast %98 : vector<4x1xf32> to vector<4x256xf32>
      %100 = arith.mulf %97, %99 : vector<4x256xf32>
      %101 = arith.addf %87, %100 : vector<4x256xf32>
      %c254_i32 = arith.constant 254 : i32
      %102 = tpu.dynamic_rotate %1 by %c254_i32 dim 1 : vector<4x256xf32>, i32 -> vector<4x256xf32>
      %c-2_i32 = arith.constant -2 : i32
      %103 = vector.broadcast %c-2_i32 : i32 to vector<1x256xi32>
      %104 = arith.cmpi sge, %3, %103 : vector<1x256xi32>
      %c14_i32 = arith.constant 14 : i32
      %105 = vector.broadcast %c14_i32 : i32 to vector<1x256xi32>
      %106 = arith.cmpi slt, %3, %105 : vector<1x256xi32>
      %107 = arith.andi %104, %106 : vector<1x256xi1>
      %cst_28 = arith.constant 0.000000e+00 : f32
      %108 = vector.shape_cast %107 : vector<1x256xi1> to vector<1x256xi1>
      %109 = vector.broadcast %108 : vector<1x256xi1> to vector<4x256xi1>
      %110 = vector.broadcast %cst_28 : f32 to vector<4x256xf32>
      %111 = arith.select %109, %102, %110 : vector<4x256xi1>, vector<4x256xf32>
      %c0_29 = arith.constant 0 : index
      %c7 = arith.constant 7 : index
      %112 = vector.load %arg6[%c0_29, %c7] : memref<4x11xf32, #tpu.memory_space<vmem>>, vector<4x1xf32>
      %113 = vector.broadcast %112 : vector<4x1xf32> to vector<4x256xf32>
      %114 = arith.mulf %111, %113 : vector<4x256xf32>
      %115 = arith.addf %101, %114 : vector<4x256xf32>
      %c253_i32 = arith.constant 253 : i32
      %116 = tpu.dynamic_rotate %1 by %c253_i32 dim 1 : vector<4x256xf32>, i32 -> vector<4x256xf32>
      %c-3_i32 = arith.constant -3 : i32
      %117 = vector.broadcast %c-3_i32 : i32 to vector<1x256xi32>
      %118 = arith.cmpi sge, %3, %117 : vector<1x256xi32>
      %c13_i32 = arith.constant 13 : i32
      %119 = vector.broadcast %c13_i32 : i32 to vector<1x256xi32>
      %120 = arith.cmpi slt, %3, %119 : vector<1x256xi32>
      %121 = arith.andi %118, %120 : vector<1x256xi1>
      %cst_30 = arith.constant 0.000000e+00 : f32
      %122 = vector.shape_cast %121 : vector<1x256xi1> to vector<1x256xi1>
      %123 = vector.broadcast %122 : vector<1x256xi1> to vector<4x256xi1>
      %124 = vector.broadcast %cst_30 : f32 to vector<4x256xf32>
      %125 = arith.select %123, %116, %124 : vector<4x256xi1>, vector<4x256xf32>
      %c0_31 = arith.constant 0 : index
      %c8 = arith.constant 8 : index
      %126 = vector.load %arg6[%c0_31, %c8] : memref<4x11xf32, #tpu.memory_space<vmem>>, vector<4x1xf32>
      %127 = vector.broadcast %126 : vector<4x1xf32> to vector<4x256xf32>
      %128 = arith.mulf %125, %127 : vector<4x256xf32>
      %129 = arith.addf %115, %128 : vector<4x256xf32>
      %c252_i32 = arith.constant 252 : i32
      %130 = tpu.dynamic_rotate %1 by %c252_i32 dim 1 : vector<4x256xf32>, i32 -> vector<4x256xf32>
      %c-4_i32 = arith.constant -4 : i32
      %131 = vector.broadcast %c-4_i32 : i32 to vector<1x256xi32>
      %132 = arith.cmpi sge, %3, %131 : vector<1x256xi32>
      %c12_i32 = arith.constant 12 : i32
      %133 = vector.broadcast %c12_i32 : i32 to vector<1x256xi32>
      %134 = arith.cmpi slt, %3, %133 : vector<1x256xi32>
      %135 = arith.andi %132, %134 : vector<1x256xi1>
      %cst_32 = arith.constant 0.000000e+00 : f32
      %136 = vector.shape_cast %135 : vector<1x256xi1> to vector<1x256xi1>
      %137 = vector.broadcast %136 : vector<1x256xi1> to vector<4x256xi1>
      %138 = vector.broadcast %cst_32 : f32 to vector<4x256xf32>
      %139 = arith.select %137, %130, %138 : vector<4x256xi1>, vector<4x256xf32>
      %c0_33 = arith.constant 0 : index
      %c9 = arith.constant 9 : index
      %140 = vector.load %arg6[%c0_33, %c9] : memref<4x11xf32, #tpu.memory_space<vmem>>, vector<4x1xf32>
      %141 = vector.broadcast %140 : vector<4x1xf32> to vector<4x256xf32>
      %142 = arith.mulf %139, %141 : vector<4x256xf32>
      %143 = arith.addf %129, %142 : vector<4x256xf32>
      %c251_i32 = arith.constant 251 : i32
      %144 = tpu.dynamic_rotate %1 by %c251_i32 dim 1 : vector<4x256xf32>, i32 -> vector<4x256xf32>
      %c-5_i32 = arith.constant -5 : i32
      %145 = vector.broadcast %c-5_i32 : i32 to vector<1x256xi32>
      %146 = arith.cmpi sge, %3, %145 : vector<1x256xi32>
      %c11_i32 = arith.constant 11 : i32
      %147 = vector.broadcast %c11_i32 : i32 to vector<1x256xi32>
      %148 = arith.cmpi slt, %3, %147 : vector<1x256xi32>
      %149 = arith.andi %146, %148 : vector<1x256xi1>
      %cst_34 = arith.constant 0.000000e+00 : f32
      %150 = vector.shape_cast %149 : vector<1x256xi1> to vector<1x256xi1>
      %151 = vector.broadcast %150 : vector<1x256xi1> to vector<4x256xi1>
      %152 = vector.broadcast %cst_34 : f32 to vector<4x256xf32>
      %153 = arith.select %151, %144, %152 : vector<4x256xi1>, vector<4x256xf32>
      %c0_35 = arith.constant 0 : index
      %c10 = arith.constant 10 : index
      %154 = vector.load %arg6[%c0_35, %c10] : memref<4x11xf32, #tpu.memory_space<vmem>>, vector<4x1xf32>
      %155 = vector.broadcast %154 : vector<4x1xf32> to vector<4x256xf32>
      %156 = arith.mulf %153, %155 : vector<4x256xf32>
      %157 = arith.addf %143, %156 : vector<4x256xf32>
      %c0_36 = arith.constant 0 : index
      %c0_37 = arith.constant 0 : index
      %158 = vector.load %arg7[%c0_36, %c0_37] : memref<4x1xf32, #tpu.memory_space<vmem>>, vector<4x1xf32>
      %159 = vector.broadcast %158 : vector<4x1xf32> to vector<4x256xf32>
      %160 = arith.addf %157, %159 : vector<4x256xf32>
      %c0_38 = arith.constant 0 : index
      %c0_39 = arith.constant 0 : index
      %c0_40 = arith.constant 0 : index
      %161 = vector.load %arg10[%c0_38, %c0_39, %c0_40] : memref<4x1x256xf32, #tpu.memory_space<vmem>>, vector<4x1x256xf32>
      %162 = vector.shape_cast %161 : vector<4x1x256xf32> to vector<4x256xf32>
      %163 = vector.shape_cast %160 : vector<4x256xf32> to vector<4x1x256xf32>
      tpu.vector_store %arg10[%c0_38, %c0_39, %c0_40], %163 {strides = array<i32>} : memref<4x1x256xf32, #tpu.memory_space<vmem>>, vector<4x1x256xf32>,
    } else {
    }
    %c2_i32 = arith.constant 2 : i32
    %10 = arith.cmpi eq, %arg1, %c2_i32 : i32
    %11 = arith.extui %10 : i1 to i32
    %c0_i32_6 = arith.constant 0 : i32
    %12 = arith.cmpi ne, %11, %c0_i32_6 : i32
    scf.if %12 {
      %cst = arith.constant 0.000000e+00 : f32
      %13 = vector.broadcast %cst : f32 to vector<4x256xf32>
      %c80_i32 = arith.constant 80 : i32
      %14 = tpu.dynamic_rotate %1 by %c80_i32 dim 1 : vector<4x256xf32>, i32 -> vector<4x256xf32>
      %c80_i32_7 = arith.constant 80 : i32
      %15 = vector.broadcast %c80_i32_7 : i32 to vector<1x256xi32>
      %16 = arith.cmpi sge, %2, %15 : vector<1x256xi32>
      %c256_i32 = arith.constant 256 : i32
      %17 = vector.broadcast %c256_i32 : i32 to vector<1x256xi32>
      %18 = arith.cmpi slt, %2, %17 : vector<1x256xi32>
      %19 = arith.andi %16, %18 : vector<1x256xi1>
      %cst_8 = arith.constant 0.000000e+00 : f32
      %20 = vector.shape_cast %19 : vector<1x256xi1> to vector<1x256xi1>
      %21 = vector.broadcast %20 : vector<1x256xi1> to vector<4x256xi1>
      %22 = vector.broadcast %cst_8 : f32 to vector<4x256xf32>
      %23 = arith.select %21, %14, %22 : vector<4x256xi1>, vector<4x256xf32>
      %c0_9 = arith.constant 0 : index
      %c0_10 = arith.constant 0 : index
      %24 = vector.load %arg8[%c0_9, %c0_10] : memref<4x11xf32, #tpu.memory_space<vmem>>, vector<4x1xf32>
      %25 = vector.broadcast %24 : vector<4x1xf32> to vector<4x256xf32>
      %26 = arith.mulf %23, %25 : vector<4x256xf32>
      %27 = arith.addf %13, %26 : vector<4x256xf32>
      %c64_i32 = arith.constant 64 : i32
      %28 = tpu.dynamic_rotate %1 by %c64_i32 dim 1 : vector<4x256xf32>, i32 -> vector<4x256xf32>
      %c64_i32_11 = arith.constant 64 : i32
      %29 = vector.broadcast %c64_i32_11 : i32 to vector<1x256xi32>
      %30 = arith.cmpi sge, %2, %29 : vector<1x256xi32>
      %c256_i32_12 = arith.constant 256 : i32
      %31 = vector.broadcast %c256_i32_12 : i32 to vector<1x256xi32>
      %32 = arith.cmpi slt, %2, %31 : vector<1x256xi32>
      %33 = arith.andi %30, %32 : vector<1x256xi1>
      %cst_13 = arith.constant 0.000000e+00 : f32
      %34 = vector.shape_cast %33 : vector<1x256xi1> to vector<1x256xi1>
      %35 = vector.broadcast %34 : vector<1x256xi1> to vector<4x256xi1>
      %36 = vector.broadcast %cst_13 : f32 to vector<4x256xf32>
      %37 = arith.select %35, %28, %36 : vector<4x256xi1>, vector<4x256xf32>
      %c0_14 = arith.constant 0 : index
      %c1 = arith.constant 1 : index
      %38 = vector.load %arg8[%c0_14, %c1] : memref<4x11xf32, #tpu.memory_space<vmem>>, vector<4x1xf32>
      %39 = vector.broadcast %38 : vector<4x1xf32> to vector<4x256xf32>
      %40 = arith.mulf %37, %39 : vector<4x256xf32>
      %41 = arith.addf %27, %40 : vector<4x256xf32>
      %c48_i32 = arith.constant 48 : i32
      %42 = tpu.dynamic_rotate %1 by %c48_i32 dim 1 : vector<4x256xf32>, i32 -> vector<4x256xf32>
      %c48_i32_15 = arith.constant 48 : i32
      %43 = vector.broadcast %c48_i32_15 : i32 to vector<1x256xi32>
      %44 = arith.cmpi sge, %2, %43 : vector<1x256xi32>
      %c256_i32_16 = arith.constant 256 : i32
      %45 = vector.broadcast %c256_i32_16 : i32 to vector<1x256xi32>
      %46 = arith.cmpi slt, %2, %45 : vector<1x256xi32>
      %47 = arith.andi %44, %46 : vector<1x256xi1>
      %cst_17 = arith.constant 0.000000e+00 : f32
      %48 = vector.shape_cast %47 : vector<1x256xi1> to vector<1x256xi1>
      %49 = vector.broadcast %48 : vector<1x256xi1> to vector<4x256xi1>
      %50 = vector.broadcast %cst_17 : f32 to vector<4x256xf32>
      %51 = arith.select %49, %42, %50 : vector<4x256xi1>, vector<4x256xf32>
      %c0_18 = arith.constant 0 : index
      %c2 = arith.constant 2 : index
      %52 = vector.load %arg8[%c0_18, %c2] : memref<4x11xf32, #tpu.memory_space<vmem>>, vector<4x1xf32>
      %53 = vector.broadcast %52 : vector<4x1xf32> to vector<4x256xf32>
      %54 = arith.mulf %51, %53 : vector<4x256xf32>
      %55 = arith.addf %41, %54 : vector<4x256xf32>
      %c32_i32 = arith.constant 32 : i32
      %56 = tpu.dynamic_rotate %1 by %c32_i32 dim 1 : vector<4x256xf32>, i32 -> vector<4x256xf32>
      %c32_i32_19 = arith.constant 32 : i32
      %57 = vector.broadcast %c32_i32_19 : i32 to vector<1x256xi32>
      %58 = arith.cmpi sge, %2, %57 : vector<1x256xi32>
      %c256_i32_20 = arith.constant 256 : i32
      %59 = vector.broadcast %c256_i32_20 : i32 to vector<1x256xi32>
      %60 = arith.cmpi slt, %2, %59 : vector<1x256xi32>
      %61 = arith.andi %58, %60 : vector<1x256xi1>
      %cst_21 = arith.constant 0.000000e+00 : f32
      %62 = vector.shape_cast %61 : vector<1x256xi1> to vector<1x256xi1>
      %63 = vector.broadcast %62 : vector<1x256xi1> to vector<4x256xi1>
      %64 = vector.broadcast %cst_21 : f32 to vector<4x256xf32>
      %65 = arith.select %63, %56, %64 : vector<4x256xi1>, vector<4x256xf32>
      %c0_22 = arith.constant 0 : index
      %c3 = arith.constant 3 : index
      %66 = vector.load %arg8[%c0_22, %c3] : memref<4x11xf32, #tpu.memory_space<vmem>>, vector<4x1xf32>
      %67 = vector.broadcast %66 : vector<4x1xf32> to vector<4x256xf32>
      %68 = arith.mulf %65, %67 : vector<4x256xf32>
      %69 = arith.addf %55, %68 : vector<4x256xf32>
      %c16_i32 = arith.constant 16 : i32
      %70 = tpu.dynamic_rotate %1 by %c16_i32 dim 1 : vector<4x256xf32>, i32 -> vector<4x256xf32>
      %c16_i32_23 = arith.constant 16 : i32
      %71 = vector.broadcast %c16_i32_23 : i32 to vector<1x256xi32>
      %72 = arith.cmpi sge, %2, %71 : vector<1x256xi32>
      %c256_i32_24 = arith.constant 256 : i32
      %73 = vector.broadcast %c256_i32_24 : i32 to vector<1x256xi32>
      %74 = arith.cmpi slt, %2, %73 : vector<1x256xi32>
      %75 = arith.andi %72, %74 : vector<1x256xi1>
      %cst_25 = arith.constant 0.000000e+00 : f32
      %76 = vector.shape_cast %75 : vector<1x256xi1> to vector<1x256xi1>
      %77 = vector.broadcast %76 : vector<1x256xi1> to vector<4x256xi1>
      %78 = vector.broadcast %cst_25 : f32 to vector<4x256xf32>
      %79 = arith.select %77, %70, %78 : vector<4x256xi1>, vector<4x256xf32>
      %c0_26 = arith.constant 0 : index
      %c4 = arith.constant 4 : index
      %80 = vector.load %arg8[%c0_26, %c4] : memref<4x11xf32, #tpu.memory_space<vmem>>, vector<4x1xf32>
      %81 = vector.broadcast %80 : vector<4x1xf32> to vector<4x256xf32>
      %82 = arith.mulf %79, %81 : vector<4x256xf32>
      %83 = arith.addf %69, %82 : vector<4x256xf32>
      %c0_27 = arith.constant 0 : index
      %c5 = arith.constant 5 : index
      %84 = vector.load %arg8[%c0_27, %c5] : memref<4x11xf32, #tpu.memory_space<vmem>>, vector<4x1xf32>
      %85 = vector.broadcast %84 : vector<4x1xf32> to vector<4x256xf32>
      %86 = arith.mulf %1, %85 : vector<4x256xf32>
      %87 = arith.addf %83, %86 : vector<4x256xf32>
      %c240_i32 = arith.constant 240 : i32
      %88 = tpu.dynamic_rotate %1 by %c240_i32 dim 1 : vector<4x256xf32>, i32 -> vector<4x256xf32>
      %c0_i32_28 = arith.constant 0 : i32
      %89 = vector.broadcast %c0_i32_28 : i32 to vector<1x256xi32>
      %90 = arith.cmpi sge, %2, %89 : vector<1x256xi32>
      %c240_i32_29 = arith.constant 240 : i32
      %91 = vector.broadcast %c240_i32_29 : i32 to vector<1x256xi32>
      %92 = arith.cmpi slt, %2, %91 : vector<1x256xi32>
      %93 = arith.andi %90, %92 : vector<1x256xi1>
      %cst_30 = arith.constant 0.000000e+00 : f32
      %94 = vector.shape_cast %93 : vector<1x256xi1> to vector<1x256xi1>
      %95 = vector.broadcast %94 : vector<1x256xi1> to vector<4x256xi1>
      %96 = vector.broadcast %cst_30 : f32 to vector<4x256xf32>
      %97 = arith.select %95, %88, %96 : vector<4x256xi1>, vector<4x256xf32>
      %c0_31 = arith.constant 0 : index
      %c6 = arith.constant 6 : index
      %98 = vector.load %arg8[%c0_31, %c6] : memref<4x11xf32, #tpu.memory_space<vmem>>, vector<4x1xf32>
      %99 = vector.broadcast %98 : vector<4x1xf32> to vector<4x256xf32>
      %100 = arith.mulf %97, %99 : vector<4x256xf32>
      %101 = arith.addf %87, %100 : vector<4x256xf32>
      %c224_i32 = arith.constant 224 : i32
      %102 = tpu.dynamic_rotate %1 by %c224_i32 dim 1 : vector<4x256xf32>, i32 -> vector<4x256xf32>
      %c0_i32_32 = arith.constant 0 : i32
      %103 = vector.broadcast %c0_i32_32 : i32 to vector<1x256xi32>
      %104 = arith.cmpi sge, %2, %103 : vector<1x256xi32>
      %c224_i32_33 = arith.constant 224 : i32
      %105 = vector.broadcast %c224_i32_33 : i32 to vector<1x256xi32>
      %106 = arith.cmpi slt, %2, %105 : vector<1x256xi32>
      %107 = arith.andi %104, %106 : vector<1x256xi1>
      %cst_34 = arith.constant 0.000000e+00 : f32
      %108 = vector.shape_cast %107 : vector<1x256xi1> to vector<1x256xi1>
      %109 = vector.broadcast %108 : vector<1x256xi1> to vector<4x256xi1>
      %110 = vector.broadcast %cst_34 : f32 to vector<4x256xf32>
      %111 = arith.select %109, %102, %110 : vector<4x256xi1>, vector<4x256xf32>
      %c0_35 = arith.constant 0 : index
      %c7 = arith.constant 7 : index
      %112 = vector.load %arg8[%c0_35, %c7] : memref<4x11xf32, #tpu.memory_space<vmem>>, vector<4x1xf32>
      %113 = vector.broadcast %112 : vector<4x1xf32> to vector<4x256xf32>
      %114 = arith.mulf %111, %113 : vector<4x256xf32>
      %115 = arith.addf %101, %114 : vector<4x256xf32>
      %c208_i32 = arith.constant 208 : i32
      %116 = tpu.dynamic_rotate %1 by %c208_i32 dim 1 : vector<4x256xf32>, i32 -> vector<4x256xf32>
      %c0_i32_36 = arith.constant 0 : i32
      %117 = vector.broadcast %c0_i32_36 : i32 to vector<1x256xi32>
      %118 = arith.cmpi sge, %2, %117 : vector<1x256xi32>
      %c208_i32_37 = arith.constant 208 : i32
      %119 = vector.broadcast %c208_i32_37 : i32 to vector<1x256xi32>
      %120 = arith.cmpi slt, %2, %119 : vector<1x256xi32>
      %121 = arith.andi %118, %120 : vector<1x256xi1>
      %cst_38 = arith.constant 0.000000e+00 : f32
      %122 = vector.shape_cast %121 : vector<1x256xi1> to vector<1x256xi1>
      %123 = vector.broadcast %122 : vector<1x256xi1> to vector<4x256xi1>
      %124 = vector.broadcast %cst_38 : f32 to vector<4x256xf32>
      %125 = arith.select %123, %116, %124 : vector<4x256xi1>, vector<4x256xf32>
      %c0_39 = arith.constant 0 : index
      %c8 = arith.constant 8 : index
      %126 = vector.load %arg8[%c0_39, %c8] : memref<4x11xf32, #tpu.memory_space<vmem>>, vector<4x1xf32>
      %127 = vector.broadcast %126 : vector<4x1xf32> to vector<4x256xf32>
      %128 = arith.mulf %125, %127 : vector<4x256xf32>
      %129 = arith.addf %115, %128 : vector<4x256xf32>
      %c192_i32 = arith.constant 192 : i32
      %130 = tpu.dynamic_rotate %1 by %c192_i32 dim 1 : vector<4x256xf32>, i32 -> vector<4x256xf32>
      %c0_i32_40 = arith.constant 0 : i32
      %131 = vector.broadcast %c0_i32_40 : i32 to vector<1x256xi32>
      %132 = arith.cmpi sge, %2, %131 : vector<1x256xi32>
      %c192_i32_41 = arith.constant 192 : i32
      %133 = vector.broadcast %c192_i32_41 : i32 to vector<1x256xi32>
      %134 = arith.cmpi slt, %2, %133 : vector<1x256xi32>
      %135 = arith.andi %132, %134 : vector<1x256xi1>
      %cst_42 = arith.constant 0.000000e+00 : f32
      %136 = vector.shape_cast %135 : vector<1x256xi1> to vector<1x256xi1>
      %137 = vector.broadcast %136 : vector<1x256xi1> to vector<4x256xi1>
      %138 = vector.broadcast %cst_42 : f32 to vector<4x256xf32>
      %139 = arith.select %137, %130, %138 : vector<4x256xi1>, vector<4x256xf32>
      %c0_43 = arith.constant 0 : index
      %c9 = arith.constant 9 : index
      %140 = vector.load %arg8[%c0_43, %c9] : memref<4x11xf32, #tpu.memory_space<vmem>>, vector<4x1xf32>
      %141 = vector.broadcast %140 : vector<4x1xf32> to vector<4x256xf32>
      %142 = arith.mulf %139, %141 : vector<4x256xf32>
      %143 = arith.addf %129, %142 : vector<4x256xf32>
      %c176_i32 = arith.constant 176 : i32
      %144 = tpu.dynamic_rotate %1 by %c176_i32 dim 1 : vector<4x256xf32>, i32 -> vector<4x256xf32>
      %c0_i32_44 = arith.constant 0 : i32
      %145 = vector.broadcast %c0_i32_44 : i32 to vector<1x256xi32>
      %146 = arith.cmpi sge, %2, %145 : vector<1x256xi32>
      %c176_i32_45 = arith.constant 176 : i32
      %147 = vector.broadcast %c176_i32_45 : i32 to vector<1x256xi32>
      %148 = arith.cmpi slt, %2, %147 : vector<1x256xi32>
      %149 = arith.andi %146, %148 : vector<1x256xi1>
      %cst_46 = arith.constant 0.000000e+00 : f32
      %150 = vector.shape_cast %149 : vector<1x256xi1> to vector<1x256xi1>
      %151 = vector.broadcast %150 : vector<1x256xi1> to vector<4x256xi1>
      %152 = vector.broadcast %cst_46 : f32 to vector<4x256xf32>
      %153 = arith.select %151, %144, %152 : vector<4x256xi1>, vector<4x256xf32>
      %c0_47 = arith.constant 0 : index
      %c10 = arith.constant 10 : index
      %154 = vector.load %arg8[%c0_47, %c10] : memref<4x11xf32, #tpu.memory_space<vmem>>, vector<4x1xf32>
      %155 = vector.broadcast %154 : vector<4x1xf32> to vector<4x256xf32>
      %156 = arith.mulf %153, %155 : vector<4x256xf32>
      %157 = arith.addf %143, %156 : vector<4x256xf32>
      %c0_48 = arith.constant 0 : index
      %c0_49 = arith.constant 0 : index
      %158 = vector.load %arg9[%c0_48, %c0_49] : memref<4x1xf32, #tpu.memory_space<vmem>>, vector<4x1xf32>
      %159 = vector.broadcast %158 : vector<4x1xf32> to vector<4x256xf32>
      %160 = arith.addf %157, %159 : vector<4x256xf32>
      %c0_50 = arith.constant 0 : index
      %c0_51 = arith.constant 0 : index
      %c0_52 = arith.constant 0 : index
      %161 = vector.load %arg10[%c0_50, %c0_51, %c0_52] : memref<4x1x256xf32, #tpu.memory_space<vmem>>, vector<4x1x256xf32>
      %162 = vector.shape_cast %161 : vector<4x1x256xf32> to vector<4x256xf32>
      %163 = vector.shape_cast %160 : vector<4x256xf32> to vector<4x1x256xf32>
      tpu.vector_store %arg10[%c0_50, %c0_51, %c0_52], %163 {strides = array<i32>} : memref<4x1x256xf32, #tpu.memory_space<vmem>>, vector<4x1x256xf32>,
    } else {
    }
    return
  }
  func.func @transform_0(%arg0: i32, %arg1: i32) -> (i32, i32, i32) {
    %c8_i32 = arith.constant 8 : i32
    %0 = arith.muli %arg0, %c8_i32 : i32
    %c5_i32 = arith.constant 5 : i32
    %1 = arith.addi %0, %c5_i32 : i32
    %2 = arith.addi %1, %arg1 : i32
    %c0_i32 = arith.constant 0 : i32
    %c0_i32_0 = arith.constant 0 : i32
    %c0_i32_1 = arith.constant 0 : i32
    return %2, %c0_i32, %c0_i32_0 : i32, i32, i32
  }
  func.func @transform_1(%arg0: i32, %arg1: i32) -> (i32, i32) {
    %c0_i32 = arith.constant 0 : i32
    %c0_i32_0 = arith.constant 0 : i32
    %c0_i32_1 = arith.constant 0 : i32
    return %c0_i32, %c0_i32_0 : i32, i32
  }
  func.func @transform_2(%arg0: i32, %arg1: i32) -> (i32, i32) {
    %c0_i32 = arith.constant 0 : i32
    %c0_i32_0 = arith.constant 0 : i32
    %c0_i32_1 = arith.constant 0 : i32
    return %c0_i32, %c0_i32_0 : i32, i32
  }
  func.func @transform_3(%arg0: i32, %arg1: i32) -> (i32, i32) {
    %c0_i32 = arith.constant 0 : i32
    %c0_i32_0 = arith.constant 0 : i32
    %c0_i32_1 = arith.constant 0 : i32
    return %c0_i32, %c0_i32_0 : i32, i32
  }
  func.func @transform_4(%arg0: i32, %arg1: i32) -> (i32, i32) {
    %c0_i32 = arith.constant 0 : i32
    %c0_i32_0 = arith.constant 0 : i32
    %c0_i32_1 = arith.constant 0 : i32
    return %c0_i32, %c0_i32_0 : i32, i32
  }
  func.func @transform_5(%arg0: i32, %arg1: i32) -> (i32, i32) {
    %c0_i32 = arith.constant 0 : i32
    %c0_i32_0 = arith.constant 0 : i32
    %c0_i32_1 = arith.constant 0 : i32
    return %c0_i32, %c0_i32_0 : i32, i32
  }
  func.func @transform_6(%arg0: i32, %arg1: i32) -> (i32, i32) {
    %c0_i32 = arith.constant 0 : i32
    %c0_i32_0 = arith.constant 0 : i32
    %c0_i32_1 = arith.constant 0 : i32
    return %c0_i32, %c0_i32_0 : i32, i32
  }
  func.func @transform_7(%arg0: i32, %arg1: i32) -> (i32, i32) {
    %c0_i32 = arith.constant 0 : i32
    %c0_i32_0 = arith.constant 0 : i32
    %c0_i32_1 = arith.constant 0 : i32
    return %c0_i32, %c0_i32_0 : i32, i32
  }
  func.func @transform_8(%arg0: i32, %arg1: i32) -> (i32, i32, i32) {
    %c8_i32 = arith.constant 8 : i32
    %0 = arith.muli %arg0, %c8_i32 : i32
    %c5_i32 = arith.constant 5 : i32
    %1 = arith.addi %0, %c5_i32 : i32
    %2 = arith.addi %1, %arg1 : i32
    %c0_i32 = arith.constant 0 : i32
    %c0_i32_0 = arith.constant 0 : i32
    %c0_i32_1 = arith.constant 0 : i32
    return %2, %c0_i32, %c0_i32_0 : i32, i32, i32
  }
}

</mosaic_0001>

<bundles_post_ra>
// kernel: _lambda_.1
= control target key start
LH: loop header
LB: loop body
LE: loop exit
PB: predicated region body
PF: predicated region fallthrough
CT: control target
= control target key end

     0   :  { %s2051_s27 = smov 0   ;;  %s2053_s28 = smov 0   ;;  %s2771_s0 = inlined_call_operand.vmem [shape: f32[64,1,256], index: 0, kind: input, shape index: {}, may-alias: {0,8}]   ;;  %s2772_s1 = inlined_call_operand.vmem [shape: s32[1,256], index: 1, kind: input, shape index: {}]   ;;  %s2773_s2 = inlined_call_operand.vmem [shape: f32[4,9], index: 2, kind: input, shape index: {}]   ;;  %s2774_s3 = inlined_call_operand.vmem [shape: f32[4,1], index: 3, kind: input, shape index: {}]   ;;  %s2775_s4 = inlined_call_operand.vmem [shape: f32[4,11], index: 4, kind: input, shape index: {}]   ;;  %s2776_s5 = inlined_call_operand.vmem [shape: f32[4,1], index: 5, kind: input, shape index: {}]   ;;  %s2777_s6 = inlined_call_operand.vmem [shape: f32[4,11], index: 6, kind: input, shape index: {}]   ;;  %s2778_s7 = inlined_call_operand.vmem [shape: f32[4,1], index: 7, kind: input, shape index: {}]   ;;  %s2779_s8 = inlined_call_operand.vmem [shape: f32[64,1,256], index: 8, kind: output, shape index: {}, may-alias: {0,8}]  }
   0x1   :  { %s2055_s29 = smov 0   ;;  %s2057_s30 = smov 0  }
   0x2   :  { %s2059_s9 = smov 0  }
   0x3 LB: > { %s27_s10 = sadd.s32 1, %s1937_s29  ;;  %s30_s11 = sadd.s32 1, %s1941_s30  ;;  %s1945_s9 = sphi %s2059_s9, %s18_s9   ;;  %s1941_s30 = sphi %s2057_s30, %s2791_s30   ;;  %s1937_s29 = sphi %s2055_s29, %s2790_s29   ;;  %s1933_s28 = sphi %s2053_s28, %s2789_s28   ;;  %s1929_s27 = sphi %s2051_s27, %s2788_s27  }
   0x4   : > { %p28_p0 = scmp.ge.s32.totalorder %s27_s10, 3  ;;  %p1761_p1 = scmp.ge.s32.totalorder %s1945_s9, 1 }
   0x5   : > { %p293_p2 = scmp.lt.s32.totalorder %s1945_s9, 7 }
   0x6   : > { %s2793_s10 = smov (%p28_p0, %s27_s10), 0  ;;  %s2795_s11 = smov (!%p28_p0, %s30_s11), %s1941_s30 }
   0x7   : > { %p294_p3 = pnand %p1761_p1, %p293_p2  ;;  %p32_p4 = scmp.ge.s32.totalorder %s2795_s11, 2 }
   0x8   : > { %s1762_s12 = sshll.u32 (!%p294_p3), %s1933_s28, 3  ;;  %p1768_p6 = scmp.ne.s32.totalorder (!%p294_p3), %s1929_s27, 0 }
   0x9   : > { %s2797_s11 = smov (%p32_p4, %s2795_s11), 0  ;;  %297 = sbr.rel (%p294_p3) target bundleno = 652 (0x28c), region = 52 }
   0xa   : > { %s334_s15 = sadd.s32 (!%p294_p3), 5, %s1762_s12 }
   0xb   : > { %s335_s16 = sadd.s32 (!%p294_p3), %s1929_s27, %s334_s15 }
   0xc   : > { %s1763_s17 = sshll.u32 (!%p294_p3), %s335_s16, 2 }
   0xd   : > { %p337_p5 = scmp.lt.s32.totalorder (!%p294_p3), %s1763_s17, 63 }
   0xe   : > { %v361_v0 = vlaneseq  ;;  %v2086_v1 = vld [vmem:[%s2772_s1] sm:$0x3]  ;;  %s1956_s19 = smov (!%p1768_p6), 15   ;;  %s1957_s20 = smov (!%p1768_p6), 1  }
   0xf   : > { %s2799_s17 = smov (!%p337_p5, %s1763_s17), 63  ;;  %368 = sbr.rel (%p1768_p6) target bundleno = 220 (0xdc), region = 56 }
  0x10   : > { %v2090_v2 = vand.u32 127, %v361_v0  ;;  %s1764_s18 = sshll.u32 %s2799_s17, 1  ;;  %s1954_s17 = smov (!%p1768_p6), 17  }
  0x11   : > { %s340_s21 = scalar_lea.vmem %s2771_s0, %s1764_s18  ;;  %s2101_s24 = scalar_lea.vmem %s2779_s8, %s1764_s18 }
  0x12   : > { %v2093_v3 = vadd.s32 128, %v2090_v2  ;;  %v2103_v4 = vld [vmem:[%s340_s21] sm:$0x3]  ;;  %v2105_v5 = vld [vmem:[%s340_s21 + $0x2] sm:$0x3]  ;;  %s1955_s18 = smov (!%p1768_p6), 16  }
  0x13   : > { %v2107_v6 = vld [vmem:[%s340_s21 + $0x4] sm:$0x3]  ;;  %v2109_v7 = vld [vmem:[%s340_s21 + $0x6] sm:$0x3]  ;;  %s1959_s26 = smov (!%p1768_p6), 127   ;;  %s1961_s28 = smov (!%p1768_p6), 113  }
  0x14   : > { %v2115_v8 = vld [vmem:[%s2773_s2] sm:$0xf]  ;;  %v1947_v10 = vmov 4   ;;  %v1948_v11 = vmov 1   ;;  %v1949_v12 = vmov 1966171168   ;;  %v373_v17 = vcombine.low %v2103_v4, %v2105_v5 }
  0x15   : > { %v473_v9 = vld [vmem:[%s2773_s2] sm:$0xf]  ;;  %1872 = vset.pattern.permute.xlu0 %v1947_v10  ;;  %1874 = vset.pattern.permute.xlu1 %v1948_v11  ;;  %v376_v13 = vunpack.c.l.s4 %v1949_v12  ;;  %v2122_v14 = vshrl.u32 %v361_v0, 7  ;;  %v374_v18 = vcombine.low %v2107_v6, %v2109_v7  ;;  %v1950_v20 = vmov 2   ;;  %s1963_s16 = smov 111  }
  0x16   : > { %552 = vperm.xlu0 %1872, %v2115_v8   ;;  %476 = vperm.xlu1 %1874, %v473_v9   ;;  %v520_v15 = vld [vmem:[%s2773_s2] sm:$0xf]  ;;  %v1951_v21 = vmov 0   ;;  %vm420_vm0 = vcmp.ge.s32.totalorder %v2086_v1, 1  ;;  %vm421_vm1 = vcmp.lt.s32.totalorder %v2086_v1, 17  ;;  %v1952_v30 = vmov 3  }
  0x17   : > { %v450_v16 = vld [vmem:[%s2773_s2] sm:$0xf]  ;;  %v377_v19 = vunpack.c.0.s8 %v376_v13  ;;  %v2139_v23 = vsub.s32 0, %v2122_v14  ;;  %v2143_v24 = vsub.s32 1, %v2122_v14  ;;  %vm422_vm2 = vmand %vm420_vm0, %vm421_vm1  ;;  %v1953_v31 = vmov 5  }
  0x18   : > { %v423_v27 = vsel %vm422_vm2, 1, %v1951_v21  ;;  %vm414_vm3 = vcmp.ge.s32.totalorder %v2090_v2, 16  ;;  %vm490_vm5 = vcmp.ge.s32.totalorder %v2086_v1, 4294967295  ;;  %vm491_vm8 = vcmp.lt.s32.totalorder %v2086_v1, 15  ;;  %v629_v47 = vld [vmem:[%s2773_s2] sm:$0xf] }
  0x19   : > { %v2136_v22 = vsub.s32 %v377_v19, %v2122_v14  ;;  %v2151_v32 = vrot.slane %v423_v27, %v2139_v23  ;;  %v2154_v33 = vrot.slane %v423_v27, %v2143_v24  ;;  %vm492_vm9 = vmand %vm490_vm5, %vm491_vm8  ;;  %v1958_v48 = vmov 6   ;;  %v668_v49 = vld [vmem:[%s2773_s2] sm:$0xf] }
  0x1a   : > { %1875 = vset.pattern.permute.xlu1 %v1950_v20  ;;  %1873 = vset.pattern.permute.xlu0 %v1951_v21  ;;  %v493_v40 = vsel %vm492_vm9, 1, %v1951_v21  ;;  %v1960_v50 = vmov 8   ;;  %vm649_vm13 = vcmp.lt.s32.totalorder %v2093_v3, 240  ;;  %v1962_v52 = vmov 7   ;;  %v691_v53 = vld [vmem:[%s2773_s2] sm:$0xf] }
  0x1b   : > { %523 = vperm.xlu1 %1875, %v520_v15   ;;  %453 = vperm.xlu0 %1873, %v450_v16   ;;  %v381_v25 = vrot.slane %v373_v17, %v2136_v22  ;;  %v388_v26 = vrot.slane %v374_v18, %v2136_v22  ;;  %vm432_vm4 = vcmp.ne.s32.totalorder %v2151_v32, 0  ;;  %vm433_vm6 = vcmp.ne.s32.totalorder %v2154_v33, 0  ;;  %v724_v54 = vld [vmem:[%s2773_s2] sm:$0xf] }
  0x1c   : > { %vm434_vm7 = vmand %vm414_vm3, %vm432_vm4  ;;  %v2178_v37 = vsel %vm433_vm6, 1, %v1951_v21  ;;  %v2186_v41 = vrot.slane %v493_v40, %v2139_v23  ;;  %v2189_v42 = vrot.slane %v493_v40, %v2143_v24  ;;  %v2233_v51 = vsel %vm432_vm4, 1, %v1951_v21  ;;  %v734_v58 = vld [vmem:[%s2774_s3] sm:$0xf] }
  0x1d   : > { %v389_v28 = vcombine.low %v381_v25, %v388_v26  ;;  %v390_v29 = vcombine.high %v381_v25, %v388_v26  ;;  %v2173_v36 = vsel %vm434_vm7, 1, %v1951_v21  ;;  %v445_v39 = vrot.slane %v2178_v37, %v2139_v23  ;;  %vm653_vm14 = vmand %vm649_vm13, %vm433_vm6 }
  0x1e   : > { %v441_v38 = vrot.slane %v2173_v36, %v2139_v23  ;;  %vm502_vm10 = vcmp.ne.s32.totalorder %v2186_v41, 0  ;;  %vm503_vm11 = vcmp.ne.s32.totalorder %v2189_v42, 0  ;;  %v2242_v55 = vsel %vm653_vm14, 1, %v1951_v21 }
  0x1f   : > { %1876 = vset.pattern.permute.xlu1 %v1952_v30  ;;  %1877 = vset.pattern.permute.xlu0 %v1953_v31  ;;  %v2157_v34 = vrot.slane %v389_v28, %v2136_v22  ;;  %v2160_v35 = vrot.slane %v390_v29, %v2136_v22  ;;  %vm504_vm12 = vmand %vm414_vm3, %vm502_vm10  ;;  %v2202_v43 = vsel %vm503_vm11, 1, %v1951_v21  ;;  %v659_v56 = vrot.slane %v2233_v51, %v2139_v23 }
  0x20   : > { %v2205_v44 = vsel %vm504_vm12, 1, %v1951_v21  ;;  %v515_v45 = vrot.slane %v2202_v43, %v2139_v23  ;;  %v663_v57 = vrot.slane %v2242_v55, %v2139_v23  ;;  %vm709_vm15 = vmand %vm649_vm13, %vm503_vm11  ;;  %v2262_v59 = vsel %vm502_vm10, 1, %v1951_v21 }
  0x21   : > { %407 = vrot.lane.b32.xlu1 %v2157_v34, %s1954_s17  ;;  %409 = vrot.lane.b32.xlu0 %v2160_v35, %s1954_s17  ;;  %v511_v46 = vrot.slane %v2205_v44, %v2139_v23  ;;  %v2265_v60 = vsel %vm709_vm15, 1, %v1951_v21  ;;  %v715_v61 = vrot.slane %v2262_v59, %v2139_v23  ;;  %v564_v11 = vsub.s32 2, %v2122_v14 }
  0x22   : > { %v719_v62 = vrot.slane %v2265_v60, %v2139_v23  ;;  %v568_v12 = vsub.s32 3, %v2122_v14  ;;  %vm464_vm0 = vcmp.lt.s32.totalorder %v2090_v2, 16  ;;  %vm411_vm1 = vcmp.lt.s32.totalorder %v2090_v2, 17 }
  0x23   : > { %vm2286_vm2 = vcmp.eq.s32.totalorder %v441_v38, 1  ;;  %vm2293_vm4 = vcmp.eq.s32.totalorder %v445_v39, 1  ;;  %vm487_vm5 = vcmp.lt.s32.totalorder %v2090_v2, 15  ;;  %vm2307_vm6 = vcmp.eq.s32.totalorder %v511_v46, 1 }
  0x24   : > { %vm534_vm7 = vcmp.lt.s32.totalorder %v2090_v2, 1  ;;  %vm537_vm8 = vcmp.eq.s32.totalorder %v2151_v32, 1  ;;  %vm538_vm9 = vcmp.eq.s32.totalorder %v2154_v33, 1  ;;  %vm622_vm10 = vcmp.lt.s32.totalorder %v2090_v2, 127 }
  0x25   : > { %460 = vrot.lane.b32.xlu1 %v2157_v34, %s1955_s18  ;;  %462 = vrot.lane.b32.xlu0 %v2160_v35, %s1955_s18  ;;  %vm625_vm11 = vcmp.eq.s32.totalorder %v2186_v41, 1  ;;  %vm626_vm12 = vcmp.eq.s32.totalorder %v2189_v42, 1  ;;  %vm643_vm14 = vcmp.lt.s32.totalorder %v2090_v2, 113  ;;  %vm664_vm15 = vcmp.eq.s32.totalorder %v659_v56, 1 }
  0x29   : > { %544 = vperm.xlu1 %1876, %v2115_v8   ;;  %483 = vrot.lane.b32.xlu0 %v2157_v34, %s1956_s19 }
  0x2d   : > { %485 = vrot.lane.b32.xlu1 %v2160_v35, %s1956_s19  ;;  %530 = vrot.lane.b32.xlu0 %v2157_v34, %s1957_s20  ;;  %s1964_s19 = smov 112  }
  0x2e   : > { %1878 = vset.pattern.permute.xlu1 %v1958_v48 }
  0x31   : > { %532 = vrot.lane.b32.xlu1 %v2160_v35, %s1957_s20  ;;  %632 = vperm.xlu0 %1877, %v629_v47  }
  0x35   : > { %671 = vperm.xlu1 %1878, %v668_v49   ;;  %620 = vrot.lane.b32.xlu0 %v2160_v35, %s1959_s26 }
  0x36   : > { %1880 = vset.pattern.permute.xlu0 %v1960_v50 }
  0x39   : > { %618 = vrot.lane.b32.xlu1 %v2157_v34, %s1959_s26  ;;  %639 = vrot.lane.b32.xlu0 %v2157_v34, %s1961_s28 }
  0x3a   : > { %1879 = vset.pattern.permute.xlu1 %v1962_v52 }
  0x3d   : > { %694 = vperm.xlu1 %1879, %v691_v53   ;;  %727 = vperm.xlu0 %1880, %v724_v54  }
  0x41   : > { %641 = vrot.lane.b32.xlu1 %v2160_v35, %s1961_s28  ;;  %701 = vrot.lane.b32.xlu0 %v2157_v34, %s1963_s16 }
  0x42   : > { %1881 = vset.pattern.permute.xlu0 %v1951_v21 }
  0x45   : > { %678 = vrot.lane.b32.xlu1 %v2157_v34, %s1964_s19  ;;  %737 = vperm.xlu0 %1881, %v734_v58  }
  0x49   : > { %680 = vrot.lane.b32.xlu1 %v2160_v35, %s1964_s19 }
  0x4d   : > { %703 = vrot.lane.b32.xlu1 %v2160_v35, %s1963_s16 }
  0x91   : > { %v553_v63 = vpop.permute.xlu0 %552  ;;  %v477_v8 = vpop.permute.xlu1 %476 }
  0x92   : > { %v557_v16 = vrot.slane %v553_v63, %v2139_v23  ;;  %v561_v17 = vrot.slane %v553_v63, %v2143_v24  ;;  %v565_v18 = vrot.slane %v553_v63, %v564_v11  ;;  %v569_v19 = vrot.slane %v553_v63, %v568_v12 }
  0x94   : > { %v574_v25 = vmul.f32 %v557_v16, %v2103_v4  ;;  %v575_v26 = vmul.f32 %v561_v17, %v2105_v5  ;;  %v576_v14 = vmul.f32 %v565_v18, %v2107_v6  ;;  %v577_v27 = vmul.f32 %v569_v19, %v2109_v7 }
  0x96   : > { %v524_v9 = vpop.permute.xlu1 %523  ;;  %v454_v10 = vpop.permute.xlu0 %453  ;;  %v582_v35 = vcombine.low %v574_v25, %v575_v26  ;;  %v583_v40 = vcombine.low %v576_v14, %v577_v27 }
  0x98   : > { %v590_v54 = vrot.slane %v582_v35, %v2136_v22  ;;  %v597_v58 = vrot.slane %v583_v40, %v2136_v22 }
  0x9a   : > { %v410_v13 = vpop.permute.xlu0 %409  ;;  %v408_v15 = vpop.permute.xlu1 %407  ;;  %v598_v19 = vcombine.low %v590_v54, %v597_v58 }
  0x9b   : > { %v412_v31 = vsel %vm411_vm1, %v408_v15, %v410_v13  ;;  %v413_v34 = vsel %vm411_vm1, %v410_v13, %v408_v15  ;;  %vm682_vm1 = vcmp.lt.s32.totalorder %v2090_v2, 112 }
  0x9c   : > { %v448_v38 = vsel %vm2286_vm2, %v413_v34, 0.0  ;;  %v449_v49 = vsel %vm2293_vm4, %v412_v31, 0.0  ;;  %vm705_vm2 = vcmp.lt.s32.totalorder %v2090_v2, 111  ;;  %vm720_vm4 = vcmp.eq.s32.totalorder %v715_v61, 1 }
  0x9d   : > { %v457_v44 = vmul.f32 %v454_v10, %v449_v49 }
  0x9e   : > { %v463_v20 = vpop.permute.xlu0 %462  ;;  %v461_v21 = vpop.permute.xlu1 %460 }
  0x9f   : > { %v466_v29 = vsel %vm464_vm0, %v463_v20, %v461_v21  ;;  %v465_v47 = vsel %vm464_vm0, %v461_v21, %v463_v20  ;;  %vm665_vm0 = vcmp.eq.s32.totalorder %v663_v57, 1 }
  0xa0   : > { %v471_v48 = vsel %vm414_vm3, %v466_v29, 0.0  ;;  %v480_v50 = vmul.f32 %v477_v8, %v465_v47  ;;  %vm2314_vm3 = vcmp.eq.s32.totalorder %v515_v45, 1 }
  0xa1   : > { %v479_v39 = vmul.f32 %v477_v8, %v471_v48  ;;  %v456_v8 = vmul.f32 %v454_v10, %v448_v38  ;;  %v599_v10 = vcombine.high %v590_v54, %v597_v58 }
  0xa2   : > { %v484_v28 = vpop.permute.xlu0 %483  ;;  %v482_v13 = vadd.f32 %v480_v50, %v457_v44 }
  0xa3   : > { %v481_v45 = vadd.f32 %v479_v39, %v456_v8  ;;  %v613_v30 = vrot.slane %v599_v10, %v2136_v22 }
  0xa4   : > { %v545_v36 = vpop.permute.xlu1 %544 }
  0xa6   : > { %v531_v37 = vpop.permute.xlu0 %530 }
  0xa8   : > { %v486_v63 = vpop.permute.xlu1 %485 }
  0xa9   : > { %v488_v46 = vsel %vm487_vm5, %v484_v28, %v486_v63  ;;  %v489_v11 = vsel %vm487_vm5, %v486_v63, %v484_v28  ;;  %vm721_vm5 = vcmp.eq.s32.totalorder %v719_v62, 1 }
  0xaa   : > { %v518_v12 = vsel %vm2307_vm6, %v489_v11, 0.0  ;;  %v519_v43 = vsel %vm2314_vm3, %v488_v46, 0.0 }
  0xab   : > { %v526_v15 = vmul.f32 %v524_v9, %v518_v12  ;;  %v527_v16 = vmul.f32 %v524_v9, %v519_v43  ;;  %v606_v9 = vrot.slane %v598_v19, %v2136_v22 }
  0xac   : > { %v533_v17 = vpop.permute.xlu1 %532  ;;  %v633_v18 = vpop.permute.xlu0 %632 }
  0xad   : > { %v528_v20 = vadd.f32 %v526_v15, %v481_v45  ;;  %v529_v21 = vadd.f32 %v527_v16, %v482_v13  ;;  %v535_v25 = vsel %vm534_vm7, %v531_v37, %v533_v17  ;;  %v536_v26 = vsel %vm534_vm7, %v533_v17, %v531_v37 }
  0xae   : > { %v539_v14 = vsel %vm537_vm8, %v536_v26, 0.0  ;;  %v540_v32 = vsel %vm538_vm9, %v535_v25, 0.0 }
  0xaf   : > { %v547_v27 = vmul.f32 %v545_v36, %v539_v14  ;;  %v548_v33 = vmul.f32 %v545_v36, %v540_v32 }
  0xb0   : > { %v672_v28 = vpop.permute.xlu1 %671  ;;  %v621_v31 = vpop.permute.xlu0 %620 }
  0xb1   : > { %v549_v29 = vadd.f32 %v547_v27, %v528_v20  ;;  %v550_v24 = vadd.f32 %v548_v33, %v529_v21 }
  0xb3   : > { %v616_v34 = vadd.f32 %v606_v9, %v549_v29  ;;  %v617_v35 = vadd.f32 %v613_v30, %v550_v24 }
  0xb4   : > { %v619_v40 = vpop.permute.xlu1 %618  ;;  %v640_v41 = vpop.permute.xlu0 %639 }
  0xb5   : > { %v623_v47 = vsel %vm622_vm10, %v619_v40, %v621_v31  ;;  %v624_v48 = vsel %vm622_vm10, %v621_v31, %v619_v40 }
  0xb6   : > { %v627_v36 = vsel %vm625_vm11, %v623_v47, 0.0  ;;  %v628_v38 = vsel %vm626_vm12, %v624_v48, 0.0 }
  0xb7   : > { %v635_v49 = vmul.f32 %v633_v18, %v627_v36  ;;  %v636_v37 = vmul.f32 %v633_v18, %v628_v38 }
  0xb8   : > { %v695_v39 = vpop.permute.xlu1 %694  ;;  %v728_v43 = vpop.permute.xlu0 %727 }
  0xb9   : > { %v637_v50 = vadd.f32 %v635_v49, %v616_v34  ;;  %v638_v52 = vadd.f32 %v636_v37, %v617_v35 }
  0xbc   : > { %v642_v42 = vpop.permute.xlu1 %641  ;;  %v702_v15 = vpop.permute.xlu0 %701 }
  0xbd   : > { %v644_v53 = vsel %vm643_vm14, %v640_v41, %v642_v42  ;;  %v645_v54 = vsel %vm643_vm14, %v642_v42, %v640_v41 }
  0xbe   : > { %v666_v58 = vsel %vm664_vm15, %v644_v53, 0.0  ;;  %v667_v63 = vsel %vm665_vm0, %v645_v54, 0.0 }
  0xbf   : > { %v674_v8 = vmul.f32 %v672_v28, %v666_v58  ;;  %v675_v44 = vmul.f32 %v672_v28, %v667_v63 }
  0xc0   : > { %v679_v46 = vpop.permute.xlu1 %678  ;;  %v738_v14 = vpop.permute.xlu0 %737 }
  0xc1   : > { %v676_v11 = vadd.f32 %v674_v8, %v637_v50  ;;  %v677_v12 = vadd.f32 %v675_v44, %v638_v52 }
  0xc4   : > { %v681_v51 = vpop.permute.xlu1 %680 }
  0xc5   : > { %v683_v56 = vsel %vm682_vm1, %v679_v46, %v681_v51  ;;  %v684_v45 = vsel %vm682_vm1, %v681_v51, %v679_v46 }
  0xc6   : > { %v690_v55 = vsel %vm649_vm13, %v684_v45, 0.0  ;;  %v697_v57 = vmul.f32 %v695_v39, %v683_v56  ;;  %vm775_vm13 = vcmp.lt.s32.totalorder %v361_v0, 256 }
  0xc7   : > { %v698_v13 = vmul.f32 %v695_v39, %v690_v55 }
  0xc8   : > { %v704_v16 = vpop.permute.xlu1 %703  ;;  %v699_v25 = vadd.f32 %v697_v57, %v676_v11 }
  0xc9   : > { %v706_v17 = vsel %vm705_vm2, %v702_v15, %v704_v16  ;;  %v707_v18 = vsel %vm705_vm2, %v704_v16, %v702_v15  ;;  %v700_v26 = vadd.f32 %v698_v13, %v677_v12 }
  0xca   : > { %v722_v19 = vsel %vm720_vm4, %v706_v17, 0.0  ;;  %v723_v10 = vsel %vm721_vm5, %v707_v18, 0.0 }
  0xcb   : > { %v730_v20 = vmul.f32 %v728_v43, %v722_v19  ;;  %v731_v21 = vmul.f32 %v728_v43, %v723_v10 }
  0xcd   : > { %v732_v59 = vadd.f32 %v730_v20, %v699_v25  ;;  %v733_v61 = vadd.f32 %v731_v21, %v700_v26 }
  0xcf   : > { %v740_v32 = vadd.f32 %v738_v14, %v732_v59  ;;  %v741_v23 = vadd.f32 %v738_v14, %v733_v61 }
  0xd1   : > { %v744_v60 = vcombine.low %v740_v32, %v741_v23 }
  0xd3   : > { %v751_v62 = vrot.slane %v744_v60, %v2136_v22 }
  0xd5   : > { %v752_v27 = vcombine.high %v751_v62, %v751_v62  ;;  %v759_v33 = vrot.slane %v751_v62, %v2136_v22 }
  0xd7   : > { %v766_v28 = vrot.slane %v752_v27, %v2136_v22  ;;  %v767_v29 = vcombine.high %v759_v33, %v759_v33  ;;  %777 = vst.msk [vmem:[%s2101_s24] sm:$0x3] %vm775_vm13, %v759_v33 }
  0xd9   : > { %v768_v24 = vcombine.high %v766_v28, %v766_v28  ;;  %778 = vst.msk [vmem:[%s2101_s24 + $0x2] sm:$0x3] %vm775_vm13, %v766_v28  ;;  %779 = vst.msk [vmem:[%s2101_s24 + $0x4] sm:$0x3] %vm775_vm13, %v767_v29 }
  0xdb   : > { %780 = vst.msk [vmem:[%s2101_s24 + $0x6] sm:$0x3] %vm775_vm13, %v768_v24 }
  0xdc PF: > { %p1769_p7 = scmp.ne.s32.totalorder %s1929_s27, 1 }
  0xdd   : > { %s1972_s13 = smov (!%p1769_p7), 5   ;;  %s1973_s14 = smov (!%p1769_p7), 4  }
  0xde   : > { %784 = sbr.rel (%p1769_p7) target bundleno = 443 (0x1bb), region = 60  ;;  %s1974_s17 = smov (!%p1769_p7), 3  }
  0xdf   : > { %s1976_s18 = smov (!%p1769_p7), 2   ;;  %s1977_s19 = smov (!%p1769_p7), 1  }
  0xe0   : > { %s1979_s22 = smov (!%p1769_p7), 127   ;;  %s1981_s26 = smov (!%p1769_p7), 126  }
  0xe1   : > { %s1985_s20 = smov (!%p1769_p7), 125   ;;  %s1986_s21 = smov (!%p1769_p7), 124  }
  0xe3   : > { %v2365_v9 = vld [vmem:[%s2775_s4] sm:$0xf]  ;;  %v1965_v22 = vmov 5   ;;  %v1966_v31 = vmov 1   ;;  %v1967_v34 = vmov 1966171168   ;;  %v789_v36 = vcombine.low %v2103_v4, %v2105_v5 }
  0xe4   : > { %v879_v30 = vld [vmem:[%s2775_s4] sm:$0xf]  ;;  %1882 = vset.pattern.permute.xlu0 %v1965_v22  ;;  %1884 = vset.pattern.permute.xlu1 %v1966_v31  ;;  %v792_v35 = vunpack.c.l.s4 %v1967_v34  ;;  %v2372_v40 = vshrl.u32 %v361_v0, 7  ;;  %v790_v38 = vcombine.low %v2107_v6, %v2109_v7  ;;  %v1968_v37 = vmov 2  }
  0xe5   : > { %989 = vperm.xlu0 %1882, %v2365_v9   ;;  %882 = vperm.xlu1 %1884, %v879_v30   ;;  %v912_v47 = vld [vmem:[%s2775_s4] sm:$0xf]  ;;  %v1969_v39 = vmov 0   ;;  %vm830_vm6 = vcmp.ge.s32.totalorder %v2086_v1, 5  ;;  %vm831_vm3 = vcmp.lt.s32.totalorder %v2086_v1, 21  ;;  %vm863_vm7 = vcmp.ge.s32.totalorder %v2086_v1, 4 }
  0xe6   : > { %v846_v48 = vld [vmem:[%s2775_s4] sm:$0xf]  ;;  %v793_v49 = vunpack.c.0.s8 %v792_v35  ;;  %v2389_v52 = vsub.s32 0, %v2372_v40  ;;  %v2392_v41 = vsub.s32 1, %v2372_v40  ;;  %vm832_vm8 = vmand %vm830_vm6, %vm831_vm3  ;;  %vm864_vm9 = vcmp.lt.s32.totalorder %v2086_v1, 20 }
  0xe7   : > { %v1970_v58 = vmov 3   ;;  %v1971_v8 = vmov 4   ;;  %v2401_v44 = vsel %vm832_vm8, 1, %v1969_v39  ;;  %vm865_vm10 = vmand %vm863_vm7, %vm864_vm9  ;;  %vm896_vm11 = vcmp.ge.s32.totalorder %v2086_v1, 3  ;;  %v945_v55 = vld [vmem:[%s2775_s4] sm:$0xf] }
  0xe8   : > { %v2386_v50 = vsub.s32 %v793_v49, %v2372_v40  ;;  %v837_v46 = vrot.slane %v2401_v44, %v2389_v52  ;;  %v841_v11 = vrot.slane %v2401_v44, %v2392_v41  ;;  %v2408_v12 = vsel %vm865_vm10, 1, %v1969_v39  ;;  %v1078_v20 = vld [vmem:[%s2775_s4] sm:$0xf] }
  0xe9   : > { %1885 = vset.pattern.permute.xlu1 %v1968_v37  ;;  %1883 = vset.pattern.permute.xlu0 %v1969_v39  ;;  %v870_v56 = vrot.slane %v2408_v12, %v2389_v52  ;;  %v874_v45 = vrot.slane %v2408_v12, %v2392_v41  ;;  %vm897_vm12 = vcmp.lt.s32.totalorder %v2086_v1, 19  ;;  %vm929_vm15 = vcmp.ge.s32.totalorder %v2086_v1, 2  ;;  %v1111_v14 = vld [vmem:[%s2775_s4] sm:$0xf] }
  0xea   : > { %915 = vperm.xlu1 %1885, %v912_v47   ;;  %849 = vperm.xlu0 %1883, %v846_v48   ;;  %v797_v42 = vrot.slane %v789_v36, %v2386_v50  ;;  %v804_v53 = vrot.slane %v790_v38, %v2386_v50  ;;  %vm898_vm14 = vmand %vm896_vm11, %vm897_vm12  ;;  %vm930_vm0 = vcmp.lt.s32.totalorder %v2086_v1, 18  ;;  %v1975_v16 = vmov 7   ;;  %v1177_v60 = vld [vmem:[%s2775_s4] sm:$0xf] }
  0xeb   : > { %v2430_v57 = vsel %vm898_vm14, 1, %v1969_v39  ;;  %vm931_vm1 = vmand %vm929_vm15, %vm930_vm0  ;;  %vm962_vm2 = vcmp.ge.s32.totalorder %v2086_v1, 1  ;;  %vm963_vm4 = vcmp.lt.s32.totalorder %v2086_v1, 17  ;;  %v1978_v10 = vmov 6   ;;  %v1144_v27 = vld [vmem:[%s2775_s4] sm:$0xf] }
  0xec   : > { %v805_v54 = vcombine.low %v797_v42, %v804_v53  ;;  %v806_v63 = vcombine.high %v797_v42, %v804_v53  ;;  %v903_v13 = vrot.slane %v2430_v57, %v2389_v52  ;;  %v907_v15 = vrot.slane %v2430_v57, %v2392_v41  ;;  %vm964_vm5 = vmand %vm962_vm2, %vm963_vm4  ;;  %v1210_v28 = vld [vmem:[%s2775_s4] sm:$0xf] }
  0xed   : > { %v2442_v17 = vsel %vm931_vm1, 1, %v1969_v39  ;;  %v2456_v21 = vsel %vm964_vm5, 1, %v1969_v39  ;;  %vm1062_vm13 = vcmp.ge.s32.totalorder %v2086_v1, 4294967295  ;;  %vm1063_vm6 = vcmp.lt.s32.totalorder %v2086_v1, 15  ;;  %v1220_v22 = vld [vmem:[%s2776_s5] sm:$0xf] }
  0xee   : > { %1886 = vset.pattern.permute.xlu1 %v1970_v58  ;;  %1887 = vset.pattern.permute.xlu0 %v1971_v8  ;;  %v2411_v43 = vrot.slane %v805_v54, %v2386_v50  ;;  %v2414_v51 = vrot.slane %v806_v63, %v2386_v50  ;;  %v936_v18 = vrot.slane %v2442_v17, %v2389_v52  ;;  %vm1064_vm3 = vmand %vm1062_vm13, %vm1063_vm6  ;;  %v1980_v59 = vmov 9  }
  0xef   : > { %v940_v19 = vrot.slane %v2442_v17, %v2392_v41  ;;  %v969_v25 = vrot.slane %v2456_v21, %v2389_v52  ;;  %v973_v26 = vrot.slane %v2456_v21, %v2392_v41  ;;  %v2471_v61 = vsel %vm1064_vm3, 1, %v1969_v39 }
  0xf0   : > { %823 = vrot.lane.b32.xlu1 %v2411_v43, %s1972_s13  ;;  %825 = vrot.lane.b32.xlu0 %v2414_v51, %s1972_s13  ;;  %v1069_v32 = vrot.slane %v2471_v61, %v2389_v52  ;;  %v1073_v23 = vrot.slane %v2471_v61, %v2392_v41  ;;  %vm1095_vm7 = vcmp.ge.s32.totalorder %v2086_v1, 4294967294  ;;  %vm1096_vm8 = vcmp.lt.s32.totalorder %v2086_v1, 14 }
  0xf1   : > { %vm1097_vm9 = vmand %vm1095_vm7, %vm1096_vm8  ;;  %v1982_v62 = vmov 8   ;;  %vm1128_vm10 = vcmp.ge.s32.totalorder %v2086_v1, 4294967293  ;;  %vm1129_vm11 = vcmp.lt.s32.totalorder %v2086_v1, 13  ;;  %vm1161_vm14 = vcmp.ge.s32.totalorder %v2086_v1, 4294967292 }
  0xf2   : > { %v2488_v33 = vsel %vm1097_vm9, 1, %v1969_v39  ;;  %vm1130_vm12 = vmand %vm1128_vm10, %vm1129_vm11  ;;  %vm1162_vm15 = vcmp.lt.s32.totalorder %v2086_v1, 12  ;;  %vm1194_vm1 = vcmp.ge.s32.totalorder %v2086_v1, 4294967291  ;;  %vm1195_vm2 = vcmp.lt.s32.totalorder %v2086_v1, 11 }
  0xf3   : > { %v1102_v29 = vrot.slane %v2488_v33, %v2389_v52  ;;  %v1106_v24 = vrot.slane %v2488_v33, %v2392_v41  ;;  %v2502_v30 = vsel %vm1130_vm12, 1, %v1969_v39  ;;  %vm1163_vm0 = vmand %vm1161_vm14, %vm1162_vm15  ;;  %vm827_vm5 = vcmp.lt.s32.totalorder %v2090_v2, 5 }
  0xf4   : > { %856 = vrot.lane.b32.xlu1 %v2411_v43, %s1973_s14  ;;  %858 = vrot.lane.b32.xlu0 %v2414_v51, %s1973_s14  ;;  %v1135_v31 = vrot.slane %v2502_v30, %v2389_v52  ;;  %v1139_v34 = vrot.slane %v2502_v30, %v2392_v41  ;;  %v2517_v35 = vsel %vm1163_vm0, 1, %v1969_v39  ;;  %vm1196_vm4 = vmand %vm1194_vm1, %vm1195_vm2  ;;  %vm842_vm13 = vcmp.eq.s32.totalorder %v837_v46, 1 }
  0xf5   : > { %v1168_v47 = vrot.slane %v2517_v35, %v2389_v52  ;;  %v1172_v48 = vrot.slane %v2517_v35, %v2392_v41  ;;  %v2527_v36 = vsel %vm1196_vm4, 1, %v1969_v39  ;;  %vm843_vm6 = vcmp.eq.s32.totalorder %v841_v11, 1 }
  0xf6   : > { %v1201_v38 = vrot.slane %v2527_v36, %v2389_v52  ;;  %v1205_v49 = vrot.slane %v2527_v36, %v2392_v41  ;;  %vm860_vm3 = vcmp.lt.s32.totalorder %v2090_v2, 4  ;;  %vm875_vm7 = vcmp.eq.s32.totalorder %v870_v56, 1 }
  0xf7   : > { %vm876_vm8 = vcmp.eq.s32.totalorder %v874_v45, 1  ;;  %v1005_v56 = vsub.s32 3, %v2372_v40  ;;  %vm893_vm9 = vcmp.lt.s32.totalorder %v2090_v2, 3  ;;  %vm908_vm10 = vcmp.eq.s32.totalorder %v903_v13, 1 }
  0xf8   : > { %948 = vperm.xlu1 %1886, %v945_v55   ;;  %889 = vrot.lane.b32.xlu0 %v2411_v43, %s1974_s17  ;;  %vm909_vm11 = vcmp.eq.s32.totalorder %v907_v15, 1  ;;  %vm926_vm12 = vcmp.lt.s32.totalorder %v2090_v2, 2  ;;  %vm941_vm14 = vcmp.eq.s32.totalorder %v936_v18, 1  ;;  %vm942_vm15 = vcmp.eq.s32.totalorder %v940_v19, 1 }
  0xf9   : > { %vm959_vm0 = vcmp.lt.s32.totalorder %v2090_v2, 1  ;;  %vm974_vm1 = vcmp.eq.s32.totalorder %v969_v25, 1  ;;  %vm975_vm2 = vcmp.eq.s32.totalorder %v973_v26, 1  ;;  %vm1059_vm4 = vcmp.lt.s32.totalorder %v2090_v2, 127 }
  0xfc   : > { %891 = vrot.lane.b32.xlu1 %v2414_v51, %s1974_s17  ;;  %981 = vperm.xlu0 %1887, %v2365_v9   ;;  %v1983_v9 = vmov 10   ;;  %s1984_s17 = smov 123  }
  0xfd   : > { %1889 = vset.pattern.permute.xlu1 %v1975_v16 }
 0x100   : > { %922 = vrot.lane.b32.xlu1 %v2411_v43, %s1976_s18  ;;  %955 = vrot.lane.b32.xlu0 %v2411_v43, %s1977_s19 }
 0x101   : > { %1888 = vset.pattern.permute.xlu0 %v1978_v10 }
 0x104   : > { %924 = vrot.lane.b32.xlu1 %v2414_v51, %s1976_s18  ;;  %1081 = vperm.xlu0 %1888, %v1078_v20  }
 0x108   : > { %957 = vrot.lane.b32.xlu1 %v2414_v51, %s1977_s19  ;;  %1057 = vrot.lane.b32.xlu0 %v2414_v51, %s1979_s22 }
 0x109   : > { %1891 = vset.pattern.permute.xlu0 %v1980_v59 }
 0x10c   : > { %1114 = vperm.xlu1 %1889, %v1111_v14   ;;  %1088 = vrot.lane.b32.xlu0 %v2411_v43, %s1981_s26 }
 0x110   : > { %1055 = vrot.lane.b32.xlu1 %v2411_v43, %s1979_s22  ;;  %1180 = vperm.xlu0 %1891, %v1177_v60   ;;  %v1001_v60 = vsub.s32 2, %v2372_v40 }
 0x111   : > { %1890 = vset.pattern.permute.xlu1 %v1982_v62 }
 0x114   : > { %1147 = vperm.xlu1 %1890, %v1144_v27   ;;  %1892 = vset.pattern.permute.xlu0 %v1983_v9 }
 0x115   : > { %1213 = vperm.xlu0 %1892, %v1210_v28  }
 0x118   : > { %1090 = vrot.lane.b32.xlu1 %v2414_v51, %s1981_s26 }
 0x119   : > { %1187 = vrot.lane.b32.xlu0 %v2411_v43, %s1984_s17 }
 0x11a   : > { %1893 = vset.pattern.permute.xlu0 %v1969_v39 }
 0x11c   : > { %1121 = vrot.lane.b32.xlu1 %v2411_v43, %s1985_s20 }
 0x11d   : > { %1223 = vperm.xlu0 %1893, %v1220_v22  }
 0x120   : > { %1123 = vrot.lane.b32.xlu1 %v2414_v51, %s1985_s20 }
 0x124   : > { %1154 = vrot.lane.b32.xlu1 %v2411_v43, %s1986_s21 }
 0x128   : > { %1156 = vrot.lane.b32.xlu1 %v2414_v51, %s1986_s21 }
 0x12c   : > { %1189 = vrot.lane.b32.xlu1 %v2414_v51, %s1984_s17 }
 0x160   : > { %v990_v37 = vpop.permute.xlu0 %989  ;;  %v883_v42 = vpop.permute.xlu1 %882 }
 0x161   : > { %v994_v12 = vrot.slane %v990_v37, %v2389_v52  ;;  %v998_v45 = vrot.slane %v990_v37, %v2392_v41  ;;  %v1002_v28 = vrot.slane %v990_v37, %v1001_v60  ;;  %v1006_v9 = vrot.slane %v990_v37, %v1005_v56 }
 0x163   : > { %v1011_v40 = vmul.f32 %v994_v12, %v2103_v4  ;;  %v1014_v37 = vmul.f32 %v1006_v9, %v2109_v7 }
 0x165   : > { %v916_v1 = vpop.permute.xlu1 %915  ;;  %v850_v53 = vpop.permute.xlu0 %849 }
 0x169   : > { %v826_v54 = vpop.permute.xlu0 %825  ;;  %v824_v58 = vpop.permute.xlu1 %823 }
 0x16a   : > { %v828_v39 = vsel %vm827_vm5, %v824_v58, %v826_v54  ;;  %v829_v63 = vsel %vm827_vm5, %v826_v54, %v824_v58  ;;  %vm1074_vm5 = vcmp.eq.s32.totalorder %v1069_v32, 1 }
 0x16b   : > { %v844_v8 = vsel %vm842_vm13, %v829_v63, 0.0  ;;  %v845_v43 = vsel %vm843_vm6, %v828_v39, 0.0  ;;  %vm1075_vm13 = vcmp.eq.s32.totalorder %v1073_v23, 1  ;;  %vm1092_vm6 = vcmp.lt.s32.totalorder %v2090_v2, 126 }
 0x16c   : > { %v852_v10 = vmul.f32 %v850_v53, %v844_v8  ;;  %v853_v20 = vmul.f32 %v850_v53, %v845_v43  ;;  %v1013_v53 = vmul.f32 %v1002_v28, %v2107_v6 }
 0x16d   : > { %v859_v51 = vpop.permute.xlu0 %858  ;;  %v857_v46 = vpop.permute.xlu1 %856 }
 0x16e   : > { %v861_v55 = vsel %vm860_vm3, %v857_v46, %v859_v51  ;;  %v862_v16 = vsel %vm860_vm3, %v859_v51, %v857_v46  ;;  %vm1107_vm3 = vcmp.eq.s32.totalorder %v1102_v29, 1 }
 0x16f   : > { %v877_v44 = vsel %vm875_vm7, %v862_v16, 0.0  ;;  %v878_v11 = vsel %vm876_vm8, %v861_v55, 0.0  ;;  %v1020_v16 = vcombine.low %v1013_v53, %v1014_v37  ;;  %vm1108_vm7 = vcmp.eq.s32.totalorder %v1106_v24, 1 }
 0x170   : > { %v885_v14 = vmul.f32 %v883_v42, %v877_v44  ;;  %v886_v59 = vmul.f32 %v883_v42, %v878_v11  ;;  %v1012_v42 = vmul.f32 %v998_v45, %v2105_v5  ;;  %vm1125_vm8 = vcmp.lt.s32.totalorder %v2090_v2, 125 }
 0x171   : > { %v890_v54 = vpop.permute.xlu0 %889 }
 0x172   : > { %v887_v62 = vadd.f32 %v885_v14, %v852_v10  ;;  %v888_v27 = vadd.f32 %v886_v59, %v853_v20  ;;  %v1019_v55 = vcombine.low %v1011_v40, %v1012_v42 }
 0x173   : > { %v949_v22 = vpop.permute.xlu1 %948 }
 0x174   : > { %v1027_v10 = vrot.slane %v1019_v55, %v2386_v50 }
 0x177   : > { %v892_v58 = vpop.permute.xlu1 %891  ;;  %v982_v39 = vpop.permute.xlu0 %981 }
 0x178   : > { %v894_v63 = vsel %vm893_vm9, %v890_v54, %v892_v58  ;;  %v895_v8 = vsel %vm893_vm9, %v892_v58, %v890_v54  ;;  %vm1140_vm9 = vcmp.eq.s32.totalorder %v1135_v31, 1 }
 0x179   : > { %v910_v43 = vsel %vm908_vm10, %v895_v8, 0.0  ;;  %v911_v51 = vsel %vm909_vm11, %v894_v63, 0.0  ;;  %vm1141_vm10 = vcmp.eq.s32.totalorder %v1139_v34, 1  ;;  %vm1158_vm11 = vcmp.lt.s32.totalorder %v2090_v2, 124 }
 0x17a   : > { %v918_v46 = vmul.f32 %v916_v1, %v910_v43  ;;  %v919_v13 = vmul.f32 %v916_v1, %v911_v51  ;;  %v1034_v1 = vrot.slane %v1020_v16, %v2386_v50 }
 0x17b   : > { %v923_v57 = vpop.permute.xlu1 %922  ;;  %v956_v11 = vpop.permute.xlu0 %955 }
 0x17c   : > { %v920_v15 = vadd.f32 %v918_v46, %v887_v62  ;;  %v921_v44 = vadd.f32 %v919_v13, %v888_v27  ;;  %v1035_v19 = vcombine.low %v1027_v10, %v1034_v1  ;;  %v1036_v12 = vcombine.high %v1027_v10, %v1034_v1 }
 0x17e   : > { %v1043_v25 = vrot.slane %v1035_v19, %v2386_v50  ;;  %v1050_v21 = vrot.slane %v1036_v12, %v2386_v50 }
 0x17f   : > { %v925_v20 = vpop.permute.xlu1 %924  ;;  %v1082_v18 = vpop.permute.xlu0 %1081 }
 0x180   : > { %v927_v14 = vsel %vm926_vm12, %v923_v57, %v925_v20  ;;  %v928_v59 = vsel %vm926_vm12, %v925_v20, %v923_v57  ;;  %vm1173_vm12 = vcmp.eq.s32.totalorder %v1168_v47, 1 }
 0x181   : > { %v943_v60 = vsel %vm941_vm14, %v928_v59, 0.0  ;;  %v944_v56 = vsel %vm942_vm15, %v927_v14, 0.0  ;;  %vm1174_vm14 = vcmp.eq.s32.totalorder %v1172_v48, 1  ;;  %vm1191_vm15 = vcmp.lt.s32.totalorder %v2090_v2, 123 }
 0x182   : > { %v951_v62 = vmul.f32 %v949_v22, %v943_v60  ;;  %v952_v27 = vmul.f32 %v949_v22, %v944_v56 }
 0x183   : > { %v958_v17 = vpop.permute.xlu1 %957  ;;  %v1058_v26 = vpop.permute.xlu0 %1057 }
 0x184   : > { %v953_v45 = vadd.f32 %v951_v62, %v920_v15  ;;  %v954_v28 = vadd.f32 %v952_v27, %v921_v44  ;;  %v960_v9 = vsel %vm959_vm0, %v956_v11, %v958_v17  ;;  %v961_v54 = vsel %vm959_vm0, %v958_v17, %v956_v11 }
 0x185   : > { %v976_v40 = vsel %vm974_vm1, %v961_v54, 0.0  ;;  %v977_v42 = vsel %vm975_vm2, %v960_v9, 0.0  ;;  %vm1206_vm0 = vcmp.eq.s32.totalorder %v1201_v38, 1  ;;  %vm1207_vm1 = vcmp.eq.s32.totalorder %v1205_v49, 1 }
 0x186   : > { %v984_v53 = vmul.f32 %v982_v39, %v976_v40  ;;  %v985_v22 = vmul.f32 %v982_v39, %v977_v42  ;;  %vm1261_vm2 = vcmp.lt.s32.totalorder %v361_v0, 256 }
 0x187   : > { %v1115_v37 = vpop.permute.xlu1 %1114  ;;  %v1089_v61 = vpop.permute.xlu0 %1088 }
 0x188   : > { %v986_v58 = vadd.f32 %v984_v53, %v953_v45  ;;  %v987_v63 = vadd.f32 %v985_v22, %v954_v28 }
 0x18a   : > { %v1053_v8 = vadd.f32 %v1043_v25, %v986_v58  ;;  %v1054_v43 = vadd.f32 %v1050_v21, %v987_v63 }
 0x18b   : > { %v1056_v39 = vpop.permute.xlu1 %1055  ;;  %v1181_v33 = vpop.permute.xlu0 %1180 }
 0x18c   : > { %v1060_v51 = vsel %vm1059_vm4, %v1056_v39, %v1058_v26  ;;  %v1061_v46 = vsel %vm1059_vm4, %v1058_v26, %v1056_v39 }
 0x18d   : > { %v1076_v13 = vsel %vm1074_vm5, %v1060_v51, 0.0  ;;  %v1077_v55 = vsel %vm1075_vm13, %v1061_v46, 0.0 }
 0x18e   : > { %v1084_v16 = vmul.f32 %v1082_v18, %v1076_v13  ;;  %v1085_v57 = vmul.f32 %v1082_v18, %v1077_v55 }
 0x18f   : > { %v1148_v15 = vpop.permute.xlu1 %1147 }
 0x190   : > { %v1086_v44 = vadd.f32 %v1084_v16, %v1053_v8  ;;  %v1087_v11 = vadd.f32 %v1085_v57, %v1054_v43  ;;  %v1214_v54 = vpop.permute.xlu0 %1213 }
 0x193   : > { %v1091_v32 = vpop.permute.xlu1 %1090 }
 0x194   : > { %v1093_v23 = vsel %vm1092_vm6, %v1089_v61, %v1091_v32  ;;  %v1094_v10 = vsel %vm1092_vm6, %v1091_v32, %v1089_v61  ;;  %v1188_v47 = vpop.permute.xlu0 %1187 }
 0x195   : > { %v1109_v1 = vsel %vm1107_vm3, %v1093_v23, 0.0  ;;  %v1110_v20 = vsel %vm1108_vm7, %v1094_v10, 0.0 }
 0x196   : > { %v1117_v14 = vmul.f32 %v1115_v37, %v1109_v1  ;;  %v1118_v59 = vmul.f32 %v1115_v37, %v1110_v20 }
 0x197   : > { %v1122_v60 = vpop.permute.xlu1 %1121 }
 0x198   : > { %v1119_v56 = vadd.f32 %v1117_v14, %v1086_v44  ;;  %v1120_v62 = vadd.f32 %v1118_v59, %v1087_v11  ;;  %v1224_v43 = vpop.permute.xlu0 %1223 }
 0x19b   : > { %v1124_v29 = vpop.permute.xlu1 %1123 }
 0x19c   : > { %v1126_v24 = vsel %vm1125_vm8, %v1122_v60, %v1124_v29  ;;  %v1127_v27 = vsel %vm1125_vm8, %v1124_v29, %v1122_v60 }
 0x19d   : > { %v1142_v17 = vsel %vm1140_vm9, %v1126_v24, 0.0  ;;  %v1143_v18 = vsel %vm1141_vm10, %v1127_v27, 0.0 }
 0x19e   : > { %v1150_v19 = vmul.f32 %v1148_v15, %v1142_v17  ;;  %v1151_v12 = vmul.f32 %v1148_v15, %v1143_v18 }
 0x19f   : > { %v1155_v45 = vpop.permute.xlu1 %1154 }
 0x1a0   : > { %v1152_v28 = vadd.f32 %v1150_v19, %v1119_v56  ;;  %v1153_v9 = vadd.f32 %v1151_v12, %v1120_v62 }
 0x1a3   : > { %v1157_v30 = vpop.permute.xlu1 %1156 }
 0x1a4   : > { %v1159_v31 = vsel %vm1158_vm11, %v1155_v45, %v1157_v30  ;;  %v1160_v34 = vsel %vm1158_vm11, %v1157_v30, %v1155_v45 }
 0x1a5   : > { %v1175_v40 = vsel %vm1173_vm12, %v1159_v31, 0.0  ;;  %v1176_v42 = vsel %vm1174_vm14, %v1160_v34, 0.0 }
 0x1a6   : > { %v1183_v53 = vmul.f32 %v1181_v33, %v1175_v40  ;;  %v1184_v22 = vmul.f32 %v1181_v33, %v1176_v42 }
 0x1a7   : > { %v1190_v35 = vpop.permute.xlu1 %1189 }
 0x1a8   : > { %v1192_v48 = vsel %vm1191_vm15, %v1188_v47, %v1190_v35  ;;  %v1193_v37 = vsel %vm1191_vm15, %v1190_v35, %v1188_v47  ;;  %v1185_v58 = vadd.f32 %v1183_v53, %v1152_v28  ;;  %v1186_v63 = vadd.f32 %v1184_v22, %v1153_v9 }
 0x1a9   : > { %v1208_v25 = vsel %vm1206_vm0, %v1192_v48, 0.0  ;;  %v1209_v21 = vsel %vm1207_vm1, %v1193_v37, 0.0 }
 0x1aa   : > { %v1216_v26 = vmul.f32 %v1214_v54, %v1208_v25  ;;  %v1217_v8 = vmul.f32 %v1214_v54, %v1209_v21 }
 0x1ac   : > { %v1218_v52 = vadd.f32 %v1216_v26, %v1185_v58  ;;  %v1219_v38 = vadd.f32 %v1217_v8, %v1186_v63 }
 0x1ae   : > { %v1226_v39 = vadd.f32 %v1224_v43, %v1218_v52  ;;  %v1227_v41 = vadd.f32 %v1224_v43, %v1219_v38 }
 0x1b0   : > { %v1230_v36 = vcombine.low %v1226_v39, %v1227_v41 }
 0x1b2   : > { %v1237_v49 = vrot.slane %v1230_v36, %v2386_v50 }
 0x1b4   : > { %v1238_v51 = vcombine.high %v1237_v49, %v1237_v49  ;;  %v1245_v46 = vrot.slane %v1237_v49, %v2386_v50 }
 0x1b6   : > { %v1252_v13 = vrot.slane %v1238_v51, %v2386_v50  ;;  %v1253_v55 = vcombine.high %v1245_v46, %v1245_v46  ;;  %1263 = vst.msk [vmem:[%s2101_s24] sm:$0x3] %vm1261_vm2, %v1245_v46 }
 0x1b8   : > { %v1254_v16 = vcombine.high %v1252_v13, %v1252_v13  ;;  %1264 = vst.msk [vmem:[%s2101_s24 + $0x2] sm:$0x3] %vm1261_vm2, %v1252_v13  ;;  %1265 = vst.msk [vmem:[%s2101_s24 + $0x4] sm:$0x3] %vm1261_vm2, %v1253_v55 }
 0x1ba   : > { %1266 = vst.msk [vmem:[%s2101_s24 + $0x6] sm:$0x3] %vm1261_vm2, %v1254_v16 }
 0x1bb PF: > { %p1770_p8 = scmp.ne.s32.totalorder %s1929_s27, 2 }
 0x1bc   : > { %s1994_s14 = smov (!%p1770_p8), 80   ;;  %s1995_s15 = smov (!%p1770_p8), 64  }
 0x1bd   : > { %1270 = sbr.rel (%p1770_p8) target bundleno = 652 (0x28c), region = 64  ;;  %s1996_s18 = smov (!%p1770_p8), 48  }
 0x1be   : > { %s1998_s19 = smov (!%p1770_p8), 16   ;;  %s1999_s20 = smov (!%p1770_p8), 32  }
 0x1bf   : > { %s2001_s23 = smov (!%p1770_p8), 112   ;;  %s2003_s27 = smov (!%p1770_p8), 96  }
 0x1c2   : > { %v1436_v57 = vld [vmem:[%s2777_s6] sm:$0xf]  ;;  %v1987_v44 = vmov 5   ;;  %v1988_v50 = vmov 1   ;;  %v1989_v11 = vmov 1966171168   ;;  %v1275_v1 = vcombine.low %v2103_v4, %v2105_v5 }
 0x1c3   : > { %v1355_v15 = vld [vmem:[%s2777_s6] sm:$0xf]  ;;  %1894 = vset.pattern.permute.xlu0 %v1987_v44  ;;  %1896 = vset.pattern.permute.xlu1 %v1988_v50  ;;  %v1278_v61 = vunpack.c.l.s4 %v1989_v11  ;;  %v2633_v32 = vshrl.u32 %v361_v0, 7  ;;  %v1276_v20 = vcombine.low %v2107_v6, %v2109_v7  ;;  %v1990_v59 = vmov 2  }
 0x1c4   : > { %1447 = vperm.xlu0 %1894, %v1436_v57   ;;  %1358 = vperm.xlu1 %1896, %v1355_v15   ;;  %v1382_v23 = vld [vmem:[%s2777_s6] sm:$0xf]  ;;  %v1991_v60 = vmov 0   ;;  %v1992_v27 = vmov 3   ;;  %v1993_v17 = vmov 4   ;;  %v1997_v45 = vmov 7  }
 0x1c5   : > { %v1328_v10 = vld [vmem:[%s2777_s6] sm:$0xf]  ;;  %v1279_v14 = vunpack.c.0.s8 %v1278_v61  ;;  %v2000_v28 = vmov 6   ;;  %v2002_v30 = vmov 9   ;;  %v2004_v34 = vmov 8  }
 0x1c6   : > { %v1409_v12 = vld [vmem:[%s2777_s6] sm:$0xf]  ;;  %v2005_v42 = vmov 10   ;;  %v1451_v52 = vsub.s32 0, %v2633_v32  ;;  %v1455_v38 = vsub.s32 1, %v2633_v32  ;;  %v1459_v39 = vsub.s32 2, %v2633_v32 }
 0x1c7   : > { %v2646_v56 = vsub.s32 %v1279_v14, %v2633_v32  ;;  %v1532_v9 = vld [vmem:[%s2777_s6] sm:$0xf]  ;;  %v1463_v41 = vsub.s32 3, %v2633_v32  ;;  %vm1342_vm4 = vcmp.lt.s32.totalorder %v2090_v2, 64  ;;  %vm1313_vm5 = vcmp.lt.s32.totalorder %v2090_v2, 80 }
 0x1c8   : > { %1897 = vset.pattern.permute.xlu1 %v1990_v59  ;;  %1895 = vset.pattern.permute.xlu0 %v1991_v60  ;;  %v1559_v54 = vld [vmem:[%s2777_s6] sm:$0xf]  ;;  %vm1369_vm13 = vcmp.lt.s32.totalorder %v2090_v2, 48  ;;  %vm1345_vm6 = vcmp.ge.s32.totalorder %v2090_v2, 64  ;;  %vm1396_vm3 = vcmp.lt.s32.totalorder %v2090_v2, 32  ;;  %vm1316_vm7 = vcmp.ge.s32.totalorder %v2090_v2, 80 }
 0x1c9   : > { %1385 = vperm.xlu1 %1897, %v1382_v23   ;;  %1331 = vperm.xlu0 %1895, %v1328_v10   ;;  %v1283_v62 = vrot.slane %v1275_v1, %v2646_v56  ;;  %v1290_v33 = vrot.slane %v1276_v20, %v2646_v56  ;;  %v1599_v31 = vld [vmem:[%s2777_s6] sm:$0xf]  ;;  %vm1372_vm8 = vcmp.ge.s32.totalorder %v2090_v2, 48  ;;  %vm1423_vm9 = vcmp.lt.s32.totalorder %v2090_v2, 16 }
 0x1ca   : > { %v1579_v40 = vld [vmem:[%s2777_s6] sm:$0xf]  ;;  %vm1399_vm10 = vcmp.ge.s32.totalorder %v2090_v2, 32  ;;  %vm1426_vm11 = vcmp.ge.s32.totalorder %v2090_v2, 16  ;;  %vm1517_vm12 = vcmp.lt.s32.totalorder %v2090_v2, 112  ;;  %vm1523_vm14 = vcmp.lt.s32.totalorder %v2093_v3, 240 }
 0x1cb   : > { %v1292_v29 = vcombine.high %v1283_v62, %v1290_v33  ;;  %v1291_v24 = vcombine.low %v1283_v62, %v1290_v33  ;;  %v1619_v53 = vld [vmem:[%s2777_s6] sm:$0xf]  ;;  %vm1546_vm15 = vcmp.lt.s32.totalorder %v2090_v2, 96  ;;  %vm1550_vm0 = vcmp.lt.s32.totalorder %v2093_v3, 224 }
 0x1cc   : > { %v1629_v22 = vld [vmem:[%s2778_s7] sm:$0xf]  ;;  %vm1570_vm1 = vcmp.lt.s32.totalorder %v2093_v3, 208  ;;  %vm1590_vm2 = vcmp.lt.s32.totalorder %v2093_v3, 192 }
 0x1cd   : > { %1898 = vset.pattern.permute.xlu1 %v1992_v27  ;;  %1899 = vset.pattern.permute.xlu0 %v1993_v17  ;;  %v1306_v18 = vrot.slane %v1292_v29, %v2646_v56  ;;  %v1299_v19 = vrot.slane %v1291_v24, %v2646_v56 }
 0x1cf   : > { %1311 = vrot.lane.b32.xlu0 %v1306_v18, %s1994_s14  ;;  %1309 = vrot.lane.b32.xlu1 %v1299_v19, %s1994_s14 }
 0x1d3   : > { %1340 = vrot.lane.b32.xlu0 %v1306_v18, %s1995_s15  ;;  %1338 = vrot.lane.b32.xlu1 %v1299_v19, %s1995_s15 }
 0x1d7   : > { %1365 = vrot.lane.b32.xlu0 %v1299_v19, %s1996_s18  ;;  %1412 = vperm.xlu1 %1898, %v1409_v12  }
 0x1db   : > { %1439 = vperm.xlu0 %1899, %v1436_v57   ;;  %1367 = vrot.lane.b32.xlu1 %v1306_v18, %s1996_s18 }
 0x1dc   : > { %1901 = vset.pattern.permute.xlu1 %v1997_v45 }
 0x1df   : > { %1419 = vrot.lane.b32.xlu0 %v1299_v19, %s1998_s19  ;;  %1392 = vrot.lane.b32.xlu1 %v1299_v19, %s1999_s20 }
 0x1e0   : > { %1900 = vset.pattern.permute.xlu0 %v2000_v28 }
 0x1e3   : > { %1535 = vperm.xlu0 %1900, %v1532_v9   ;;  %1394 = vrot.lane.b32.xlu1 %v1306_v18, %s1999_s20 }
 0x1e7   : > { %1515 = vrot.lane.b32.xlu0 %v1306_v18, %s2001_s23  ;;  %1421 = vrot.lane.b32.xlu1 %v1306_v18, %s1998_s19 }
 0x1e8   : > { %1903 = vset.pattern.permute.xlu0 %v2002_v30 }
 0x1eb   : > { %1542 = vrot.lane.b32.xlu0 %v1299_v19, %s2003_s27  ;;  %1562 = vperm.xlu1 %1901, %v1559_v54  }
 0x1ef   : > { %1602 = vperm.xlu0 %1903, %v1599_v31   ;;  %1513 = vrot.lane.b32.xlu1 %v1299_v19, %s2001_s23 }
 0x1f0   : > { %1902 = vset.pattern.permute.xlu1 %v2004_v34 }
 0x1f3   : > { %1582 = vperm.xlu1 %1902, %v1579_v40   ;;  %1906 = vset.pattern.permute.xlu0 %v1991_v60 }
 0x1f7   : > { %1544 = vrot.lane.b32.xlu1 %v1306_v18, %s2003_s27 }
 0x1f8   : > { %1904 = vset.pattern.permute.xlu1 %v2005_v42 }
 0x1fb   : > { %1622 = vperm.xlu1 %1904, %v1619_v53  }
 0x1ff   : > { %1905 = vset.pattern.permute.xlu1 %v1991_v60 }
 0x200   : > { %1632 = vperm.xlu1 %1905, %v1629_v22  }
 0x23f   : > { %v1448_v47 = vpop.permute.xlu0 %1447  ;;  %v1359_v35 = vpop.permute.xlu1 %1358 }
 0x240   : > { %v1452_v51 = vrot.slane %v1448_v47, %v1451_v52  ;;  %v1456_v46 = vrot.slane %v1448_v47, %v1455_v38  ;;  %v1460_v13 = vrot.slane %v1448_v47, %v1459_v39  ;;  %v1464_v55 = vrot.slane %v1448_v47, %v1463_v41 }
 0x242   : > { %v1469_v44 = vmul.f32 %v1452_v51, %v2103_v4  ;;  %v1470_v50 = vmul.f32 %v1456_v46, %v2105_v5  ;;  %v1471_v11 = vmul.f32 %v1460_v13, %v2107_v6  ;;  %v1472_v61 = vmul.f32 %v1464_v55, %v2109_v7 }
 0x244   : > { %v1386_v48 = vpop.permute.xlu1 %1385  ;;  %v1332_v37 = vpop.permute.xlu0 %1331  ;;  %v1477_v10 = vcombine.low %v1469_v44, %v1470_v50  ;;  %v1478_v1 = vcombine.low %v1471_v11, %v1472_v61 }
 0x246   : > { %v1485_v45 = vrot.slane %v1477_v10, %v2646_v56  ;;  %v1492_v30 = vrot.slane %v1478_v1, %v2646_v56 }
 0x248   : > { %v1312_v58 = vpop.permute.xlu0 %1311  ;;  %v1310_v63 = vpop.permute.xlu1 %1309 }
 0x249   : > { %v2693_v32 = vsel %vm1313_vm5, %v1312_v58, %v1310_v63  ;;  %v1314_v60 = vsel %vm1313_vm5, %v1310_v63, %v1312_v58  ;;  %vm1670_vm5 = vcmp.lt.s32.totalorder %v361_v0, 256 }
 0x24a   : > { %v1326_v20 = vsel %vm1316_vm7, %v2693_v32, 0.0  ;;  %v1335_v28 = vmul.f32 %v1332_v37, %v1314_v60  ;;  %v1578_v10 = vsel %vm1570_vm1, %v2693_v32, 0.0 }
 0x24b   : > { %v1334_v17 = vmul.f32 %v1332_v37, %v1326_v20 }
 0x24c   : > { %v1341_v25 = vpop.permute.xlu0 %1340  ;;  %v1339_v21 = vpop.permute.xlu1 %1338 }
 0x24d   : > { %v2683_v57 = vsel %vm1342_vm4, %v1341_v25, %v1339_v21  ;;  %v2708_v7 = vsel %vm1342_vm4, %v1339_v21, %v1341_v25  ;;  %v1493_v21 = vcombine.low %v1485_v45, %v1492_v30  ;;  %vm1610_vm4 = vcmp.lt.s32.totalorder %v2093_v3, 176 }
 0x24e   : > { %v1353_v4 = vsel %vm1345_vm6, %v2683_v57, 0.0  ;;  %v1362_v27 = vmul.f32 %v1359_v35, %v2708_v7 }
 0x24f   : > { %v1361_v62 = vmul.f32 %v1359_v35, %v1353_v4 }
 0x250   : > { %v1366_v26 = vpop.permute.xlu0 %1365  ;;  %v1364_v22 = vadd.f32 %v1362_v27, %v1335_v28 }
 0x251   : > { %v1363_v31 = vadd.f32 %v1361_v62, %v1334_v17 }
 0x252   : > { %v1413_v8 = vpop.permute.xlu1 %1412 }
 0x256   : > { %v1368_v43 = vpop.permute.xlu1 %1367  ;;  %v1440_v36 = vpop.permute.xlu0 %1439 }
 0x257   : > { %v2698_v23 = vsel %vm1369_vm13, %v1368_v43, %v1366_v26  ;;  %v2716_v33 = vsel %vm1369_vm13, %v1366_v26, %v1368_v43  ;;  %v1494_v43 = vcombine.high %v1485_v45, %v1492_v30 }
 0x258   : > { %v1380_v14 = vsel %vm1372_vm8, %v2698_v23, 0.0  ;;  %v1389_v9 = vmul.f32 %v1386_v48, %v2716_v33 }
 0x259   : > { %v1388_v18 = vmul.f32 %v1386_v48, %v1380_v14  ;;  %v1508_v46 = vrot.slane %v1494_v43, %v2646_v56 }
 0x25a   : > { %v1393_v49 = vpop.permute.xlu1 %1392  ;;  %v1420_v16 = vpop.permute.xlu0 %1419  ;;  %v1391_v37 = vadd.f32 %v1389_v9, %v1364_v22 }
 0x25b   : > { %v1390_v47 = vadd.f32 %v1388_v18, %v1363_v31 }
 0x25e   : > { %v1395_v15 = vpop.permute.xlu1 %1394  ;;  %v1536_v59 = vpop.permute.xlu0 %1535 }
 0x25f   : > { %v1398_v5 = vsel %vm1396_vm3, %v1395_v15, %v1393_v49  ;;  %v1397_v19 = vsel %vm1396_vm3, %v1393_v49, %v1395_v15 }
 0x260   : > { %v1407_v24 = vsel %vm1399_vm10, %v1398_v5, 0.0  ;;  %v1416_v42 = vmul.f32 %v1413_v8, %v1397_v19  ;;  %v1618_v19 = vsel %vm1610_vm4, %v2698_v23, 0.0 }
 0x261   : > { %v1415_v34 = vmul.f32 %v1413_v8, %v1407_v24 }
 0x262   : > { %v1422_v6 = vpop.permute.xlu1 %1421  ;;  %v1516_v53 = vpop.permute.xlu0 %1515  ;;  %v1418_v26 = vadd.f32 %v1416_v42, %v1391_v37 }
 0x263   : > { %v1425_v29 = vsel %vm1423_vm9, %v1422_v6, %v1420_v16  ;;  %v1424_v40 = vsel %vm1423_vm9, %v1420_v16, %v1422_v6  ;;  %v1417_v25 = vadd.f32 %v1415_v34, %v1390_v47 }
 0x264   : > { %v1434_v54 = vsel %vm1426_vm11, %v1425_v29, 0.0  ;;  %v1443_v63 = vmul.f32 %v1440_v36, %v1424_v40  ;;  %v1598_v29 = vsel %vm1590_vm2, %v2683_v57, 0.0 }
 0x265   : > { %v1442_v35 = vmul.f32 %v1440_v36, %v1434_v54  ;;  %v1501_v36 = vrot.slane %v1493_v21, %v2646_v56 }
 0x266   : > { %v1563_v12 = vpop.permute.xlu1 %1562  ;;  %v1543_v41 = vpop.permute.xlu0 %1542  ;;  %v1445_v49 = vadd.f32 %v1443_v63, %v1418_v26 }
 0x267   : > { %v1444_v8 = vadd.f32 %v1442_v35, %v1417_v25 }
 0x268   : > { %v1512_v15 = vadd.f32 %v1508_v46, %v1445_v49 }
 0x269   : > { %v1511_v55 = vadd.f32 %v1501_v36, %v1444_v8 }
 0x26a   : > { %v1514_v58 = vpop.permute.xlu1 %1513  ;;  %v1603_v5 = vpop.permute.xlu0 %1602 }
 0x26b   : > { %v1519_v48 = vsel %vm1517_vm12, %v1516_v53, %v1514_v58  ;;  %v1518_v52 = vsel %vm1517_vm12, %v1514_v58, %v1516_v53  ;;  %v1605_v24 = vmul.f32 %v1603_v5, %v2708_v7  ;;  %v1606_v17 = vmul.f32 %v1603_v5, %v1598_v29 }
 0x26c   : > { %v1531_v38 = vsel %vm1523_vm14, %v1519_v48, 0.0  ;;  %v1538_v51 = vmul.f32 %v1536_v59, %v1518_v52 }
 0x26d   : > { %v1539_v13 = vmul.f32 %v1536_v59, %v1531_v38 }
 0x26e   : > { %v1583_v39 = vpop.permute.xlu1 %1582  ;;  %v1540_v11 = vadd.f32 %v1538_v51, %v1511_v55 }
 0x26f   : > { %v1541_v6 = vadd.f32 %v1539_v13, %v1512_v15  ;;  %v1585_v1 = vmul.f32 %v1583_v39, %v1314_v60  ;;  %v1586_v14 = vmul.f32 %v1583_v39, %v1578_v10 }
 0x272   : > { %v1545_v16 = vpop.permute.xlu1 %1544 }
 0x273   : > { %v1547_v44 = vsel %vm1546_vm15, %v1543_v41, %v1545_v16  ;;  %v1548_v50 = vsel %vm1546_vm15, %v1545_v16, %v1543_v41 }
 0x274   : > { %v1558_v61 = vsel %vm1550_vm0, %v1548_v50, 0.0  ;;  %v1565_v4 = vmul.f32 %v1563_v12, %v1547_v44 }
 0x275   : > { %v1566_v2 = vmul.f32 %v1563_v12, %v1558_v61 }
 0x276   : > { %v1567_v20 = vadd.f32 %v1565_v4, %v1540_v11  ;;  %v1623_v62 = vpop.permute.xlu1 %1622 }
 0x277   : > { %v1568_v59 = vadd.f32 %v1566_v2, %v1541_v6  ;;  %v1625_v12 = vmul.f32 %v1623_v62, %v2716_v33  ;;  %v1626_v60 = vmul.f32 %v1623_v62, %v1618_v19 }
 0x278   : > { %v1587_v27 = vadd.f32 %v1585_v1, %v1567_v20 }
 0x279   : > { %v1588_v18 = vadd.f32 %v1586_v14, %v1568_v59 }
 0x27a   : > { %v1607_v32 = vadd.f32 %v1605_v24, %v1587_v27 }
 0x27b   : > { %v1608_v45 = vadd.f32 %v1606_v17, %v1588_v18  ;;  %v1633_v28 = vpop.permute.xlu1 %1632 }
 0x27c   : > { %v1627_v3 = vadd.f32 %v1625_v12, %v1607_v32 }
 0x27d   : > { %v1628_v9 = vadd.f32 %v1626_v60, %v1608_v45 }
 0x27e   : > { %v1635_v57 = vadd.f32 %v1633_v28, %v1627_v3 }
 0x27f   : > { %v1636_v54 = vadd.f32 %v1633_v28, %v1628_v9 }
 0x281   : > { %v1639_v7 = vcombine.low %v1635_v57, %v1636_v54 }
 0x283   : > { %v1646_v30 = vrot.slane %v1639_v7, %v2646_v56 }
 0x285   : > { %v1647_v23 = vcombine.high %v1646_v30, %v1646_v30  ;;  %v1654_v33 = vrot.slane %v1646_v30, %v2646_v56 }
 0x287   : > { %v1661_v31 = vrot.slane %v1647_v23, %v2646_v56  ;;  %v1662_v34 = vcombine.high %v1654_v33, %v1654_v33  ;;  %1672 = vst.msk [vmem:[%s2101_s24] sm:$0x3] %vm1670_vm5, %v1654_v33 }
 0x289   : > { %v1663_v40 = vcombine.high %v1661_v31, %v1661_v31  ;;  %1673 = vst.msk [vmem:[%s2101_s24 + $0x2] sm:$0x3] %vm1670_vm5, %v1661_v31  ;;  %1674 = vst.msk [vmem:[%s2101_s24 + $0x4] sm:$0x3] %vm1670_vm5, %v1662_v34 }
 0x28b   : > { %1675 = vst.msk [vmem:[%s2101_s24 + $0x6] sm:$0x3] %vm1670_vm5, %v1663_v40 }
 0x28c PF: > { %s18_s9 = sadd.s32 1, %s1945_s9   ;;  %s2788_s27 = smov %s1937_s29 }
 0x28d   : > { %p15_p9 = scmp.ge.s32.totalorder %s18_s9, 8   ;;  %s2789_s28 = smov %s1941_s30 }
 0x28e   : > { %s2790_s29 = smov %s2793_s10  ;;  %s2791_s30 = smov %s2797_s11 }
 0x28f   :  { %17 = sbr.rel (!%p15_p9) target bundleno = 3 (0x3), region = 94 }

</bundles_post_ra>
